<compile_context>
chip_gen: v6e
topology: v6e:2x2x1
jax: 0.10.0
libtpu: 0.0.40
codegen_flags: <defaults>
</compile_context>

<pallas_src>
import functools

import jax
import jax.numpy as jnp
from jax import lax
from jax.experimental import pallas as pl
from jax.experimental.pallas import tpu as pltpu

_NEG_INF = -1e30                      # finite: avoids exp(-inf - -inf) NaNs
_VMEM_LIMIT = 48 * 1024 * 1024        # sized for v7x's 64 MiB physical VMEM


def _pick_block(total, target):
    """Largest row block <= target that evenly divides `total`."""
    if total <= target:
        return total
    return target if total % target == 0 else total


def _dotT(a, b):
    """a @ b.T (contract last dims) without materialising a transpose."""
    return lax.dot_general(a, b, (((1,), (1,)), ((), ())),
                           preferred_element_type=jnp.float32)


def _skew_rpr(qe, row_ids, col_ids):
    """Music-Transformer skew: srel[i, j] = qe[i, Le-1-i+j] for j <= i else 0.

    Implemented as a log2(Le)-depth butterfly of static lane rotations
    (2-piece concatenates) with per-row bit selects.  `row_ids` holds GLOBAL
    query indices so this also works under Lq tiling.
    """
    Le = qe.shape[-1]
    # numpy-roll amount per row: a_i = (i + 1) mod Le, so that
    #   rolled[i, j] = qe[i, (j - a_i) mod Le] = qe[i, (Le-1-i+j) mod Le]
    amount = (row_ids[:, :1] + 1) % Le                       # (bq, 1) int32
    cur = qe
    for b in range(max(1, (Le - 1).bit_length())):
        sh = 1 << b
        if sh >= Le:
            break
        rolled = jnp.concatenate([cur[:, Le - sh:], cur[:, :Le - sh]], axis=-1)
        take = ((amount >> b) & 1).astype(jnp.bool_)
        cur = jnp.where(take, rolled, cur)
    # zero the wrapped upper triangle (j > i): bias is exact even without a
    # causal mask (matches the reference _qe_masking + _skew behaviour).
    return jnp.where(row_ids >= col_ids, cur, 0.0)


# ----------------------------------------------------------------------------
# Fused multi-head attention (+ RPR bias + mask + out-proj + residual + LN)
# ----------------------------------------------------------------------------
def _fused_mha_kernel(*refs, nhead, scale, block_q, has_mask, has_er, causal,
                      eps):
    it = iter(refs)
    xq_ref = next(it)                          # (1, bq, D)   activations
    xkv_ref = next(it)                         # (1, Lk, D)   (== xq for self)
    w_ref = next(it)                           # (D, 3D) bf16, cols [Wq|Wk|Wv]
    bqkv_ref = next(it)                        # (1, 3D) f32
    er_ref = next(it) if has_er else None      # (Le, hd) bf16, Le == Lk
    mask_ref = next(it) if has_mask else None  # (bq, Lk) f32 additive
    wout_ref = next(it)                        # (D, D)  bf16
    bout_ref = next(it)                        # (1, D)  f32
    g_ref = next(it)                           # (1, D)  f32
    b_ref = next(it)                           # (1, D)  f32
    o_ref = next(it)                           # (1, bq, D)

    xq = xq_ref[0]
    xkv = xkv_ref[0]
    bq, D = xq.shape
    Lk = xkv.shape[0]
    hd = D // nhead

    x_res = xq.astype(jnp.float32)             # residual kept in f32
    bqkv = bqkv_ref[...].astype(jnp.float32)

    # Q / KV projections (bf16 MXU inputs, f32 accumulation).
    q = jnp.dot(xq.astype(jnp.bfloat16), w_ref[:, :D],
                preferred_element_type=jnp.float32) + bqkv[:, :D]
    kv = jnp.dot(xkv.astype(jnp.bfloat16), w_ref[:, D:],
                 preferred_element_type=jnp.float32) + bqkv[:, D:]
    k, v = kv[:, :D], kv[:, D:]
    q = q * scale                              # PyTorch MHA scaling (pre-RPR)

    need_ids = causal or has_er
    if need_ids:
        q0 = pl.program_id(1) * block_q        # global row offset of this tile
        row_ids = q0 + lax.broadcasted_iota(jnp.int32, (bq, Lk), 0)
        col_ids = lax.broadcasted_iota(jnp.int32, (bq, Lk), 1)
    if has_mask:
        add_mask = mask_ref[...].astype(jnp.float32)
    if has_er:
        er_b = er_ref[...]                     # (Le, hd) bf16, hoisted

    heads = []
    # TODO(synk): for production Lq/Lk, batch head pairs / pad hd to >=128 so
    # the 256-wide v6e/v7x MXU is filled, and stream K/V over an Lk grid axis
    # with an online softmax (flash-style) to bound the VMEM working set.
    for h in range(nhead):                     # static unroll over heads
        sl = slice(h * hd, (h + 1) * hd)       # heads = contiguous col slices
        q_h = q[:, sl].astype(jnp.bfloat16)
        k_h = k[:, sl].astype(jnp.bfloat16)
        v_h = v[:, sl].astype(jnp.bfloat16)
        s = _dotT(q_h, k_h)                    # (bq, Lk) f32, no transpose
        if has_er:
            qe = _dotT(q_h, er_b)              # (bq, Le) rel-pos logits
            s = s + _skew_rpr(qe, row_ids, col_ids)
        if has_mask:
            s = s + add_mask
        if causal:
            s = jnp.where(row_ids >= col_ids, s, _NEG_INF)
        m = jnp.max(s, axis=-1, keepdims=True)
        p = jnp.exp(s - m)
        l = jnp.sum(p, axis=-1, keepdims=True)
        o_h = jnp.dot(p.astype(jnp.bfloat16), v_h,
                      preferred_element_type=jnp.float32)
        heads.append(o_h * pl.reciprocal(l, approx=True))   # EUP reciprocal

    # Single full-D output projection (K = D contraction keeps the MXU full).
    att = jnp.concatenate(heads, axis=-1).astype(jnp.bfloat16)   # (bq, D)
    proj = jnp.dot(att, wout_ref[...], preferred_element_type=jnp.float32)
    proj = proj + bout_ref[...].astype(jnp.float32)

    # residual + LayerNorm (PyTorch semantics: biased variance), in f32.
    y = x_res + proj
    mean = jnp.mean(y, axis=-1, keepdims=True)
    var = jnp.mean(jnp.square(y - mean), axis=-1, keepdims=True)
    yn = (y - mean) * lax.rsqrt(var + eps)
    o_ref[0] = (yn * g_ref[...] + b_ref[...]).astype(o_ref.dtype)


def fused_mha_ln(xq, xkv, p, nhead, gamma, beta, *, mask=None, er=None,
                 causal=False, block_q=256, eps=1e-5):
    """LayerNorm(xq + MultiHeadAttention(xq, xkv, xkv)) as one pallas_call.

    Grid is (batch, q-tiles), both parallel (both v7x TensorCores get work).
    K/V are projected from the full xkv block per q-tile.
    """
    N, Lq, D = xq.shape
    Lk = xkv.shape[1]
    hd = D // nhead
    scale = float(hd) ** -0.5
    has_mask = mask is not None
    has_er = er is not None
    if has_er:
        # TODO(synk): support clamped er_len < seq_len (reference slices Er).
        assert Lq == Lk == er.shape[0], "RPR bias needs er_len == len_q == len_k"
    bq = _pick_block(Lq, block_q)
    nq = Lq // bq

    # Pre-cast big weights to bf16 once (half the DMA/VMEM, no in-kernel cast).
    w_in = p["in_proj_w"].astype(jnp.bfloat16)
    w_out = p["out_proj_w"].astype(jnp.bfloat16)

    inputs = [xq, xkv, w_in,
              p["in_proj_b"].reshape(1, 3 * D).astype(jnp.float32)]
    in_specs = [
        pl.BlockSpec((1, bq, D), lambda n, qi: (n, qi, 0)),
        pl.BlockSpec((1, Lk, D), lambda n, qi: (n, 0, 0)),
        pl.BlockSpec((D, 3 * D), lambda n, qi: (0, 0)),
        pl.BlockSpec((1, 3 * D), lambda n, qi: (0, 0)),
    ]
    if has_er:
        inputs.append(er.astype(jnp.bfloat16))
        in_specs.append(pl.BlockSpec((Lk, hd), lambda n, qi: (0, 0)))
    if has_mask:
        inputs.append(mask.astype(jnp.float32))
        in_specs.append(pl.BlockSpec((bq, Lk), lambda n, qi: (qi, 0)))
    inputs += [w_out, p["out_proj_b"].reshape(1, D).astype(jnp.float32),
               gamma.reshape(1, D).astype(jnp.float32),
               beta.reshape(1, D).astype(jnp.float32)]
    in_specs += [pl.BlockSpec((D, D), lambda n, qi: (0, 0)),
                 pl.BlockSpec((1, D), lambda n, qi: (0, 0)),
                 pl.BlockSpec((1, D), lambda n, qi: (0, 0)),
                 pl.BlockSpec((1, D), lambda n, qi: (0, 0))]

    kernel = functools.partial(
        _fused_mha_kernel, nhead=nhead, scale=scale, block_q=bq,
        has_mask=has_mask, has_er=has_er, causal=causal, eps=eps)
    # TODO(synk): mark constant-index operands (weights/biases/er) with
    # pipeline_mode=pl.Buffered(1) to reclaim their double-buffer VMEM on v7x.
    return pl.pallas_call(
        kernel,
        out_shape=jax.ShapeDtypeStruct((N, Lq, D), xq.dtype),
        grid=(N, nq),
        in_specs=in_specs,
        out_specs=pl.BlockSpec((1, bq, D), lambda n, qi: (n, qi, 0)),
        compiler_params=pltpu.CompilerParams(
            dimension_semantics=("parallel", "parallel"),
            vmem_limit_bytes=_VMEM_LIMIT),
    )(*inputs)


# ----------------------------------------------------------------------------
# Fused feed-forward block:  LN(x + linear2(relu(linear1(x))))
# ----------------------------------------------------------------------------
def _fused_ffn_kernel(x_ref, w1_ref, b1_ref, w2_ref, b2_ref, g_ref, b_ref,
                      o_ref, *, eps):
    x_in = x_ref[0]                            # (bl, D)
    x = x_in.astype(jnp.float32)
    h = jnp.dot(x_in.astype(jnp.bfloat16), w1_ref[...],
                preferred_element_type=jnp.float32) + b1_ref[...].astype(jnp.float32)
    h = jnp.maximum(h, 0.0)
    ff = jnp.dot(h.astype(jnp.bfloat16), w2_ref[...],
                 preferred_element_type=jnp.float32) + b2_ref[...].astype(jnp.float32)
    y = x + ff
    mean = jnp.mean(y, axis=-1, keepdims=True)
    var = jnp.mean(jnp.square(y - mean), axis=-1, keepdims=True)
    yn = (y - mean) * lax.rsqrt(var + eps)
    o_ref[0] = (yn * g_ref[...] + b_ref[...]).astype(o_ref.dtype)


def fused_ffn_ln(x, p, gamma, beta, *, block_l=256, eps=1e-5):
    N, L, D = x.shape
    dff = p["linear1_w"].shape[1]
    bl = _pick_block(L, block_l)
    # TODO(synk): also tile dff as a reduction grid axis with a VMEM f32
    # accumulator for production dff (2k-4k) so (bl, dff) never OOMs VMEM.
    w1 = p["linear1_w"].astype(jnp.bfloat16)
    w2 = p["linear2_w"].astype(jnp.bfloat16)
    return pl.pallas_call(
        functools.partial(_fused_ffn_kernel, eps=eps),
        out_shape=jax.ShapeDtypeStruct((N, L, D), x.dtype),
        grid=(N, L // bl),
        in_specs=[
            pl.BlockSpec((1, bl, D), lambda n, r: (n, r, 0)),
            pl.BlockSpec((D, dff), lambda n, r: (0, 0)),
            pl.BlockSpec((1, dff), lambda n, r: (0, 0)),
            pl.BlockSpec((dff, D), lambda n, r: (0, 0)),
            pl.BlockSpec((1, D), lambda n, r: (0, 0)),
            pl.BlockSpec((1, D), lambda n, r: (0, 0)),
            pl.BlockSpec((1, D), lambda n, r: (0, 0)),
        ],
        out_specs=pl.BlockSpec((1, bl, D), lambda n, r: (n, r, 0)),
        compiler_params=pltpu.CompilerParams(
            dimension_semantics=("parallel", "parallel"),
            vmem_limit_bytes=_VMEM_LIMIT),
    )(x, w1, p["linear1_b"].reshape(1, dff).astype(jnp.float32),
      w2, p["linear2_b"].reshape(1, D).astype(jnp.float32),
      gamma.reshape(1, D).astype(jnp.float32),
      beta.reshape(1, D).astype(jnp.float32))


# ----------------------------------------------------------------------------
# Decoder layer / decoder stack (batch-first, bf16 activations between kernels)
# ----------------------------------------------------------------------------
def decoder_layer_rpr(x, memory, p, nhead, tgt_mask=None, memory_mask=None,
                      tgt_is_causal=False):
    x = fused_mha_ln(x, x, p["self_attn"], nhead, p["norm1_g"], p["norm1_b"],
                     mask=tgt_mask, er=p["self_attn"]["er"],
                     causal=tgt_is_causal)
    x = fused_mha_ln(x, memory, p["cross_attn"], nhead, p["norm2_g"],
                     p["norm2_b"], mask=memory_mask)
    x = fused_ffn_ln(x, p, p["norm3_g"], p["norm3_b"])
    return x


def transformer_decoder_rpr(tgt, memory, layer_params, nhead, tgt_mask=None,
                            memory_mask=None, tgt_is_causal=False,
                            activation_dtype=jnp.bfloat16):
    # TransformerDecoderRPR.forward: sequential cloned layers.
    # (L, N, D) -> (N, L, D) once; bf16 activations between the fused kernels
    # halve the HBM round-trip traffic of the 3 pallas_calls per layer.
    # TODO(synk): dropout is identity in eval mode and is omitted;
    # tgt/memory key_padding_masks are not supported (reference passes None).
    out_dtype = tgt.dtype
    x = jnp.transpose(tgt, (1, 0, 2)).astype(activation_dtype)
    mem = jnp.transpose(memory, (1, 0, 2)).astype(activation_dtype)
    for p in layer_params:
        x = decoder_layer_rpr(x, mem, p, nhead, tgt_mask, memory_mask,
                              tgt_is_causal=tgt_is_causal)
    return jnp.transpose(x, (1, 0, 2)).astype(out_dtype)


def causal_mask(sz):
    """Additive causal mask (only needed if not using causal=True in-kernel)."""
    i = jnp.arange(sz)[:, None]
    j = jnp.arange(sz)[None, :]
    return jnp.where(j <= i, 0.0, _NEG_INF).astype(jnp.float32)


# ----------------------------------------------------------------------------
# Deterministic parameter init (synthetic; no checkpoint loading).
# Weights stored (in_features, out_features) so no per-call transposes.
# ----------------------------------------------------------------------------
def init_layer_params(key, d_model, nhead, dff, er_len):
    hd = d_model // nhead
    ks = jax.random.split(key, 8)

    def u(k, shape, fan_in):
        bound = 1.0 / float(fan_in) ** 0.5
        return jax.random.uniform(k, shape, jnp.float32, -bound, bound)

    def attn(k_in, k_out, k_er=None):
        d = {
            "in_proj_w": u(k_in, (d_model, 3 * d_model), d_model),
            "in_proj_b": jnp.zeros((3 * d_model,), jnp.float32),
            "out_proj_w": u(k_out, (d_model, d_model), d_model),
            "out_proj_b": jnp.zeros((d_model,), jnp.float32),
        }
        if k_er is not None:  # Er ~ U[0,1) as in Music Transformer
            d["er"] = jax.random.uniform(k_er, (er_len, hd), jnp.float32)
        return d

    return {
        "self_attn": attn(ks[0], ks[1], ks[2]),
        "cross_attn": attn(ks[3], ks[4]),
        "linear1_w": u(ks[5], (d_model, dff), d_model),
        "linear1_b": jnp.zeros((dff,), jnp.float32),
        "linear2_w": u(ks[6], (dff, d_model), dff),
        "linear2_b": jnp.zeros((d_model,), jnp.float32),
        "norm1_g": jnp.ones((d_model,), jnp.float32),
        "norm1_b": jnp.zeros((d_model,), jnp.float32),
        "norm2_g": jnp.ones((d_model,), jnp.float32),
        "norm2_b": jnp.zeros((d_model,), jnp.float32),
        "norm3_g": jnp.ones((d_model,), jnp.float32),
        "norm3_b": jnp.zeros((d_model,), jnp.float32),
    }


# ----------------------------------------------------------------------------
# Pure-JAX reference (mirrors the kernels' precision choices) for self-check.
# ----------------------------------------------------------------------------
def _ref_mha_ln(xq, xkv, p, nhead, gamma, beta, *, mask=None, er=None,
                causal=False, eps=1e-5):
    N, Lq, D = xq.shape
    Lk = xkv.shape[1]
    hd = D // nhead
    scale = float(hd) ** -0.5
    w = p["in_proj_w"].astype(jnp.bfloat16)
    x32 = xq.astype(jnp.float32)
    q = jnp.einsum("nld,de->nle", xq.astype(jnp.bfloat16), w[:, :D],
                   preferred_element_type=jnp.float32) + p["in_proj_b"][:D]
    kv = jnp.einsum("nld,de->nle", xkv.astype(jnp.bfloat16), w[:, D:],
                    preferred_element_type=jnp.float32) + p["in_proj_b"][D:]
    k, v = kv[..., :D], kv[..., D:]
    q = q * scale
    i = jnp.arange(Lq)[:, None]
    j = jnp.arange(Lk)[None, :]
    heads = []
    for h in range(nhead):
        sl = slice(h * hd, (h + 1) * hd)
        qh = q[..., sl].astype(jnp.bfloat16)
        kh = k[..., sl].astype(jnp.bfloat16)
        vh = v[..., sl].astype(jnp.bfloat16)
        s = jnp.einsum("nqc,nkc->nqk", qh, kh,
                       preferred_element_type=jnp.float32)
        if er is not None:
            Le = er.shape[0]
            qe = jnp.einsum("nqc,ec->nqe", qh, er.astype(jnp.bfloat16),
                            preferred_element_type=jnp.float32)
            idx = Le - 1 - i + j
            valid = (j <= i) & (idx >= 0)
            idx3 = jnp.broadcast_to(jnp.clip(idx, 0, Le - 1)[None], (N, Lq, Lk))
            srel = jnp.where(valid[None],
                             jnp.take_along_axis(qe, idx3, axis=-1), 0.0)
            s = s + srel
        if mask is not None:
            s = s + mask[None].astype(jnp.float32)
        if causal:
            s = jnp.where((i >= j)[None], s, _NEG_INF)
        m = s.max(-1, keepdims=True)
        e = jnp.exp(s - m)
        l = e.sum(-1, keepdims=True)
        o = jnp.einsum("nqk,nkc->nqc", e.astype(jnp.bfloat16), vh,
                       preferred_element_type=jnp.float32) / l
        heads.append(o)
    att = jnp.concatenate(heads, axis=-1).astype(jnp.bfloat16)
    proj = jnp.einsum("nqd,de->nqe", att, p["out_proj_w"].astype(jnp.bfloat16),
                      preferred_element_type=jnp.float32) + p["out_proj_b"]
    y = x32 + proj
    mean = y.mean(-1, keepdims=True)
    var = ((y - mean) ** 2).mean(-1, keepdims=True)
    yn = (y - mean) * lax.rsqrt(var + eps)
    return (yn * gamma + beta).astype(xq.dtype)


def _ref_ffn_ln(x, p, gamma, beta, eps=1e-5):
    x32 = x.astype(jnp.float32)
    h = jnp.einsum("nld,df->nlf", x.astype(jnp.bfloat16),
                   p["linear1_w"].astype(jnp.bfloat16),
                   preferred_element_type=jnp.float32) + p["linear1_b"]
    h = jnp.maximum(h, 0.0)
    ff = jnp.einsum("nlf,fd->nld", h.astype(jnp.bfloat16),
                    p["linear2_w"].astype(jnp.bfloat16),
                    preferred_element_type=jnp.float32) + p["linear2_b"]
    y = x32 + ff
    mean = y.mean(-1, keepdims=True)
    var = ((y - mean) ** 2).mean(-1, keepdims=True)
    yn = (y - mean) * lax.rsqrt(var + eps)
    return (yn * gamma + beta).astype(x.dtype)


def _ref_decoder(tgt, memory, layer_params, nhead, tgt_mask=None,
                 memory_mask=None, tgt_is_causal=False,
                 activation_dtype=jnp.bfloat16):
    out_dtype = tgt.dtype
    x = jnp.transpose(tgt, (1, 0, 2)).astype(activation_dtype)
    mem = jnp.transpose(memory, (1, 0, 2)).astype(activation_dtype)
    for p in layer_params:
        x = _ref_mha_ln(x, x, p["self_attn"], nhead, p["norm1_g"],
                        p["norm1_b"], mask=tgt_mask, er=p["self_attn"]["er"],
                        causal=tgt_is_causal)
        x = _ref_mha_ln(x, mem, p["cross_attn"], nhead, p["norm2_g"],
                        p["norm2_b"], mask=memory_mask)
        x = _ref_ffn_ln(x, p, p["norm3_g"], p["norm3_b"])
    return jnp.transpose(x, (1, 0, 2)).astype(out_dtype)


# ----------------------------------------------------------------------------
if __name__ == "__main__":
    d_model, nhead, dff, num_layers = 32, 4, 64, 2
    s_tgt, s_mem, batch = 8, 16, 2

    key = jax.random.PRNGKey(0)
    k_tgt, k_mem, k_par = jax.random.split(key, 3)
    tgt = jax.random.normal(k_tgt, (s_tgt, batch, d_model), jnp.float32)
    memory = jax.random.normal(k_mem, (s_mem, batch, d_model), jnp.float32)

    # _get_clones deep-copies the layer -> all layers start with identical params.
    base = init_layer_params(k_par, d_model, nhead, dff, er_len=s_tgt)
    layer_params = [base for _ in range(num_layers)]

    run = jax.jit(functools.partial(transformer_decoder_rpr, nhead=nhead,
                                    tgt_is_causal=True))
    out = jax.block_until_ready(run(tgt, memory, layer_params))

    assert out.shape == (s_tgt, batch, d_model)
    assert bool(jnp.all(jnp.isfinite(out)))

    # Self-check against a pure-JAX reference with matched precision choices.
    ref = _ref_decoder(tgt, memory, layer_params, nhead, tgt_is_causal=True)
    max_err = float(jnp.max(jnp.abs(out - ref)))
    assert max_err < 2e-2, f"kernel/reference mismatch: max_err={max_err}"

    print("KERNEL_OK")
</pallas_src>

<mosaic_0001>
module attributes {stable_mosaic.version = 11 : i64} {
  func.func @_fused_mha_kernel(%arg0: i32, %arg1: i32, %arg2: memref<1x8x32xbf16, #tpu.memory_space<vmem>>, %arg3: memref<1x16x32xbf16, #tpu.memory_space<vmem>>, %arg4: memref<32x96xbf16, #tpu.memory_space<vmem>>, %arg5: memref<1x96xf32, #tpu.memory_space<vmem>>, %arg6: memref<32x32xbf16, #tpu.memory_space<vmem>>, %arg7: memref<1x32xf32, #tpu.memory_space<vmem>>, %arg8: memref<1x32xf32, #tpu.memory_space<vmem>>, %arg9: memref<1x32xf32, #tpu.memory_space<vmem>>, %arg10: memref<1x8x32xbf16, #tpu.memory_space<vmem>>) attributes {dimension_semantics = [#tpu.dimension_semantics<parallel>, #tpu.dimension_semantics<parallel>], iteration_bounds = array<i64: 2, 1>, scalar_prefetch = 0 : i64, scratch_operands = 0 : i64, tpu.core_type = #tpu.core_type<tc>, window_params = [{transform_indices = @transform_0, window_bounds = array<i64: 1, 8, 32>}, {transform_indices = @transform_1, window_bounds = array<i64: 1, 16, 32>}, {pipeline_mode = #tpu.pipeline_mode<synchronous>, transform_indices = @transform_2, window_bounds = array<i64: 32, 96>}, {pipeline_mode = #tpu.pipeline_mode<synchronous>, transform_indices = @transform_3, window_bounds = array<i64: 1, 96>}, {pipeline_mode = #tpu.pipeline_mode<synchronous>, transform_indices = @transform_4, window_bounds = array<i64: 32, 32>}, {pipeline_mode = #tpu.pipeline_mode<synchronous>, transform_indices = @transform_5, window_bounds = array<i64: 1, 32>}, {pipeline_mode = #tpu.pipeline_mode<synchronous>, transform_indices = @transform_6, window_bounds = array<i64: 1, 32>}, {pipeline_mode = #tpu.pipeline_mode<synchronous>, transform_indices = @transform_7, window_bounds = array<i64: 1, 32>}, {transform_indices = @transform_8, window_bounds = array<i64: 1, 8, 32>}]} {
    %c0 = arith.constant 0 : index
    %c0_0 = arith.constant 0 : index
    %c0_1 = arith.constant 0 : index
    %0 = vector.load %arg2[%c0, %c0_0, %c0_1] : memref<1x8x32xbf16, #tpu.memory_space<vmem>>, vector<1x8x32xbf16>
    %1 = vector.shape_cast %0 : vector<1x8x32xbf16> to vector<8x32xbf16>
    %c0_2 = arith.constant 0 : index
    %c0_3 = arith.constant 0 : index
    %c0_4 = arith.constant 0 : index
    %2 = vector.load %arg3[%c0_2, %c0_3, %c0_4] : memref<1x16x32xbf16, #tpu.memory_space<vmem>>, vector<1x16x32xbf16>
    %3 = vector.shape_cast %2 : vector<1x16x32xbf16> to vector<16x32xbf16>
    %4 = arith.extf %1 : vector<8x32xbf16> to vector<8x32xf32>
    %c0_5 = arith.constant 0 : index
    %c0_6 = arith.constant 0 : index
    %5 = vector.load %arg5[%c0_5, %c0_6] : memref<1x96xf32, #tpu.memory_space<vmem>>, vector<1x96xf32>
    %c0_7 = arith.constant 0 : index
    %c0_8 = arith.constant 0 : index
    %6 = vector.load %arg4[%c0_7, %c0_8] : memref<32x96xbf16, #tpu.memory_space<vmem>>, vector<32x32xbf16>
    %cst = arith.constant dense<0.000000e+00> : vector<8x32xf32>
    %7 = tpu.matmul %1, %6, %cst {dimension_numbers = #tpu.dot_dimension_numbers<[1], [0], [0], [1], [0, 0, 1, 1], [], []>} : vector<8x32xbf16>, vector<32x32xbf16>, vector<8x32xf32> -> vector<8x32xf32>
    %8 = vector.extract_strided_slice %5 {offsets = [0, 0], sizes = [1, 32], strides = [1, 1]} : vector<1x96xf32> to vector<1x32xf32>
    %9 = vector.broadcast %8 : vector<1x32xf32> to vector<8x32xf32>
    %10 = arith.addf %7, %9 : vector<8x32xf32>
    %c0_9 = arith.constant 0 : index
    %c32 = arith.constant 32 : index
    %11 = vector.load %arg4[%c0_9, %c32] : memref<32x96xbf16, #tpu.memory_space<vmem>>, vector<32x64xbf16>
    %cst_10 = arith.constant dense<0.000000e+00> : vector<16x64xf32>
    %12 = tpu.matmul %3, %11, %cst_10 {dimension_numbers = #tpu.dot_dimension_numbers<[1], [0], [0], [1], [0, 0, 1, 1], [], []>} : vector<16x32xbf16>, vector<32x64xbf16>, vector<16x64xf32> -> vector<16x64xf32>
    %13 = vector.extract_strided_slice %5 {offsets = [0, 32], sizes = [1, 64], strides = [1, 1]} : vector<1x96xf32> to vector<1x64xf32>
    %14 = vector.broadcast %13 : vector<1x64xf32> to vector<16x64xf32>
    %15 = arith.addf %12, %14 : vector<16x64xf32>
    %16 = vector.extract_strided_slice %15 {offsets = [0, 0], sizes = [16, 32], strides = [1, 1]} : vector<16x64xf32> to vector<16x32xf32>
    %17 = vector.extract_strided_slice %15 {offsets = [0, 32], sizes = [16, 32], strides = [1, 1]} : vector<16x64xf32> to vector<16x32xf32>
    %cst_11 = arith.constant 0.353553385 : f32
    %18 = vector.broadcast %cst_11 : f32 to vector<8x32xf32>
    %19 = arith.mulf %10, %18 : vector<8x32xf32>
    %20 = vector.extract_strided_slice %19 {offsets = [0, 0], sizes = [8, 8], strides = [1, 1]} : vector<8x32xf32> to vector<8x8xf32>
    %21 = arith.truncf %20 : vector<8x8xf32> to vector<8x8xbf16>
    %22 = vector.extract_strided_slice %16 {offsets = [0, 0], sizes = [16, 8], strides = [1, 1]} : vector<16x32xf32> to vector<16x8xf32>
    %23 = arith.truncf %22 : vector<16x8xf32> to vector<16x8xbf16>
    %24 = vector.extract_strided_slice %17 {offsets = [0, 0], sizes = [16, 8], strides = [1, 1]} : vector<16x32xf32> to vector<16x8xf32>
    %25 = arith.truncf %24 : vector<16x8xf32> to vector<16x8xbf16>
    %cst_12 = arith.constant dense<0.000000e+00> : vector<8x16xf32>
    %26 = tpu.matmul %21, %23, %cst_12 {dimension_numbers = #tpu.dot_dimension_numbers<[1], [1], [0], [0], [0, 0, 1, 0], [], []>} : vector<8x8xbf16>, vector<16x8xbf16>, vector<8x16xf32> -> vector<8x16xf32>
    %cst_13 = arith.constant dense<0xFF800000> : vector<8xf32>
    %27 = vector.multi_reduction <maximumf>, %26, %cst_13 [1] : vector<8x16xf32> to vector<8xf32>
    %28 = vector.shape_cast %27 : vector<8xf32> to vector<8x1xf32>
    %29 = vector.broadcast %28 : vector<8x1xf32> to vector<8x16xf32>
    %30 = arith.subf %26, %29 : vector<8x16xf32>
    %31 = math.exp %30 : vector<8x16xf32>
    %cst_14 = arith.constant dense<0.000000e+00> : vector<8xf32>
    %32 = vector.multi_reduction <add>, %31, %cst_14 [1] : vector<8x16xf32> to vector<8xf32>
    %33 = vector.shape_cast %32 : vector<8xf32> to vector<8x1xf32>
    %34 = arith.truncf %31 : vector<8x16xf32> to vector<8x16xbf16>
    %cst_15 = arith.constant dense<0.000000e+00> : vector<8x8xf32>
    %35 = tpu.matmul %34, %25, %cst_15 {dimension_numbers = #tpu.dot_dimension_numbers<[1], [0], [0], [1], [0, 0, 1, 1], [], []>} : vector<8x16xbf16>, vector<16x8xbf16>, vector<8x8xf32> -> vector<8x8xf32>
    %36 = tpu.reciprocal %33 {approx = true} : vector<8x1xf32> -> vector<8x1xf32>
    %37 = vector.broadcast %36 : vector<8x1xf32> to vector<8x8xf32>
    %38 = arith.mulf %35, %37 : vector<8x8xf32>
    %39 = vector.extract_strided_slice %19 {offsets = [0, 8], sizes = [8, 8], strides = [1, 1]} : vector<8x32xf32> to vector<8x8xf32>
    %40 = arith.truncf %39 : vector<8x8xf32> to vector<8x8xbf16>
    %41 = vector.extract_strided_slice %16 {offsets = [0, 8], sizes = [16, 8], strides = [1, 1]} : vector<16x32xf32> to vector<16x8xf32>
    %42 = arith.truncf %41 : vector<16x8xf32> to vector<16x8xbf16>
    %43 = vector.extract_strided_slice %17 {offsets = [0, 8], sizes = [16, 8], strides = [1, 1]} : vector<16x32xf32> to vector<16x8xf32>
    %44 = arith.truncf %43 : vector<16x8xf32> to vector<16x8xbf16>
    %cst_16 = arith.constant dense<0.000000e+00> : vector<8x16xf32>
    %45 = tpu.matmul %40, %42, %cst_16 {dimension_numbers = #tpu.dot_dimension_numbers<[1], [1], [0], [0], [0, 0, 1, 0], [], []>} : vector<8x8xbf16>, vector<16x8xbf16>, vector<8x16xf32> -> vector<8x16xf32>
    %cst_17 = arith.constant dense<0xFF800000> : vector<8xf32>
    %46 = vector.multi_reduction <maximumf>, %45, %cst_17 [1] : vector<8x16xf32> to vector<8xf32>
    %47 = vector.shape_cast %46 : vector<8xf32> to vector<8x1xf32>
    %48 = vector.broadcast %47 : vector<8x1xf32> to vector<8x16xf32>
    %49 = arith.subf %45, %48 : vector<8x16xf32>
    %50 = math.exp %49 : vector<8x16xf32>
    %cst_18 = arith.constant dense<0.000000e+00> : vector<8xf32>
    %51 = vector.multi_reduction <add>, %50, %cst_18 [1] : vector<8x16xf32> to vector<8xf32>
    %52 = vector.shape_cast %51 : vector<8xf32> to vector<8x1xf32>
    %53 = arith.truncf %50 : vector<8x16xf32> to vector<8x16xbf16>
    %cst_19 = arith.constant dense<0.000000e+00> : vector<8x8xf32>
    %54 = tpu.matmul %53, %44, %cst_19 {dimension_numbers = #tpu.dot_dimension_numbers<[1], [0], [0], [1], [0, 0, 1, 1], [], []>} : vector<8x16xbf16>, vector<16x8xbf16>, vector<8x8xf32> -> vector<8x8xf32>
    %55 = tpu.reciprocal %52 {approx = true} : vector<8x1xf32> -> vector<8x1xf32>
    %56 = vector.broadcast %55 : vector<8x1xf32> to vector<8x8xf32>
    %57 = arith.mulf %54, %56 : vector<8x8xf32>
    %58 = vector.extract_strided_slice %19 {offsets = [0, 16], sizes = [8, 8], strides = [1, 1]} : vector<8x32xf32> to vector<8x8xf32>
    %59 = arith.truncf %58 : vector<8x8xf32> to vector<8x8xbf16>
    %60 = vector.extract_strided_slice %16 {offsets = [0, 16], sizes = [16, 8], strides = [1, 1]} : vector<16x32xf32> to vector<16x8xf32>
    %61 = arith.truncf %60 : vector<16x8xf32> to vector<16x8xbf16>
    %62 = vector.extract_strided_slice %17 {offsets = [0, 16], sizes = [16, 8], strides = [1, 1]} : vector<16x32xf32> to vector<16x8xf32>
    %63 = arith.truncf %62 : vector<16x8xf32> to vector<16x8xbf16>
    %cst_20 = arith.constant dense<0.000000e+00> : vector<8x16xf32>
    %64 = tpu.matmul %59, %61, %cst_20 {dimension_numbers = #tpu.dot_dimension_numbers<[1], [1], [0], [0], [0, 0, 1, 0], [], []>} : vector<8x8xbf16>, vector<16x8xbf16>, vector<8x16xf32> -> vector<8x16xf32>
    %cst_21 = arith.constant dense<0xFF800000> : vector<8xf32>
    %65 = vector.multi_reduction <maximumf>, %64, %cst_21 [1] : vector<8x16xf32> to vector<8xf32>
    %66 = vector.shape_cast %65 : vector<8xf32> to vector<8x1xf32>
    %67 = vector.broadcast %66 : vector<8x1xf32> to vector<8x16xf32>
    %68 = arith.subf %64, %67 : vector<8x16xf32>
    %69 = math.exp %68 : vector<8x16xf32>
    %cst_22 = arith.constant dense<0.000000e+00> : vector<8xf32>
    %70 = vector.multi_reduction <add>, %69, %cst_22 [1] : vector<8x16xf32> to vector<8xf32>
    %71 = vector.shape_cast %70 : vector<8xf32> to vector<8x1xf32>
    %72 = arith.truncf %69 : vector<8x16xf32> to vector<8x16xbf16>
    %cst_23 = arith.constant dense<0.000000e+00> : vector<8x8xf32>
    %73 = tpu.matmul %72, %63, %cst_23 {dimension_numbers = #tpu.dot_dimension_numbers<[1], [0], [0], [1], [0, 0, 1, 1], [], []>} : vector<8x16xbf16>, vector<16x8xbf16>, vector<8x8xf32> -> vector<8x8xf32>
    %74 = tpu.reciprocal %71 {approx = true} : vector<8x1xf32> -> vector<8x1xf32>
    %75 = vector.broadcast %74 : vector<8x1xf32> to vector<8x8xf32>
    %76 = arith.mulf %73, %75 : vector<8x8xf32>
    %77 = vector.extract_strided_slice %19 {offsets = [0, 24], sizes = [8, 8], strides = [1, 1]} : vector<8x32xf32> to vector<8x8xf32>
    %78 = arith.truncf %77 : vector<8x8xf32> to vector<8x8xbf16>
    %79 = vector.extract_strided_slice %16 {offsets = [0, 24], sizes = [16, 8], strides = [1, 1]} : vector<16x32xf32> to vector<16x8xf32>
    %80 = arith.truncf %79 : vector<16x8xf32> to vector<16x8xbf16>
    %81 = vector.extract_strided_slice %17 {offsets = [0, 24], sizes = [16, 8], strides = [1, 1]} : vector<16x32xf32> to vector<16x8xf32>
    %82 = arith.truncf %81 : vector<16x8xf32> to vector<16x8xbf16>
    %cst_24 = arith.constant dense<0.000000e+00> : vector<8x16xf32>
    %83 = tpu.matmul %78, %80, %cst_24 {dimension_numbers = #tpu.dot_dimension_numbers<[1], [1], [0], [0], [0, 0, 1, 0], [], []>} : vector<8x8xbf16>, vector<16x8xbf16>, vector<8x16xf32> -> vector<8x16xf32>
    %cst_25 = arith.constant dense<0xFF800000> : vector<8xf32>
    %84 = vector.multi_reduction <maximumf>, %83, %cst_25 [1] : vector<8x16xf32> to vector<8xf32>
    %85 = vector.shape_cast %84 : vector<8xf32> to vector<8x1xf32>
    %86 = vector.broadcast %85 : vector<8x1xf32> to vector<8x16xf32>
    %87 = arith.subf %83, %86 : vector<8x16xf32>
    %88 = math.exp %87 : vector<8x16xf32>
    %cst_26 = arith.constant dense<0.000000e+00> : vector<8xf32>
    %89 = vector.multi_reduction <add>, %88, %cst_26 [1] : vector<8x16xf32> to vector<8xf32>
    %90 = vector.shape_cast %89 : vector<8xf32> to vector<8x1xf32>
    %91 = arith.truncf %88 : vector<8x16xf32> to vector<8x16xbf16>
    %cst_27 = arith.constant dense<0.000000e+00> : vector<8x8xf32>
    %92 = tpu.matmul %91, %82, %cst_27 {dimension_numbers = #tpu.dot_dimension_numbers<[1], [0], [0], [1], [0, 0, 1, 1], [], []>} : vector<8x16xbf16>, vector<16x8xbf16>, vector<8x8xf32> -> vector<8x8xf32>
    %93 = tpu.reciprocal %90 {approx = true} : vector<8x1xf32> -> vector<8x1xf32>
    %94 = vector.broadcast %93 : vector<8x1xf32> to vector<8x8xf32>
    %95 = arith.mulf %92, %94 : vector<8x8xf32>
    %96 = tpu.concatenate %38, %57, %76, %95 in 1 : vector<8x8xf32>, vector<8x8xf32>, vector<8x8xf32>, vector<8x8xf32> -> vector<8x32xf32>
    %97 = arith.truncf %96 : vector<8x32xf32> to vector<8x32xbf16>
    %c0_28 = arith.constant 0 : index
    %c0_29 = arith.constant 0 : index
    %98 = vector.load %arg6[%c0_28, %c0_29] : memref<32x32xbf16, #tpu.memory_space<vmem>>, vector<32x32xbf16>
    %cst_30 = arith.constant dense<0.000000e+00> : vector<8x32xf32>
    %99 = tpu.matmul %97, %98, %cst_30 {dimension_numbers = #tpu.dot_dimension_numbers<[1], [0], [0], [1], [0, 0, 1, 1], [], []>} : vector<8x32xbf16>, vector<32x32xbf16>, vector<8x32xf32> -> vector<8x32xf32>
    %c0_31 = arith.constant 0 : index
    %c0_32 = arith.constant 0 : index
    %100 = vector.load %arg7[%c0_31, %c0_32] : memref<1x32xf32, #tpu.memory_space<vmem>>, vector<1x32xf32>
    %101 = vector.broadcast %100 : vector<1x32xf32> to vector<8x32xf32>
    %102 = arith.addf %99, %101 : vector<8x32xf32>
    %103 = arith.addf %4, %102 : vector<8x32xf32>
    %cst_33 = arith.constant dense<0.000000e+00> : vector<8xf32>
    %104 = vector.multi_reduction <add>, %103, %cst_33 [1] : vector<8x32xf32> to vector<8xf32>
    %105 = vector.shape_cast %104 : vector<8xf32> to vector<8x1xf32>
    %cst_34 = arith.constant 3.200000e+01 : f32
    %106 = vector.broadcast %cst_34 : f32 to vector<8x1xf32>
    %107 = arith.divf %105, %106 : vector<8x1xf32>
    %108 = vector.broadcast %107 : vector<8x1xf32> to vector<8x32xf32>
    %109 = arith.subf %103, %108 : vector<8x32xf32>
    %110 = arith.mulf %109, %109 : vector<8x32xf32>
    %cst_35 = arith.constant dense<0.000000e+00> : vector<8xf32>
    %111 = vector.multi_reduction <add>, %110, %cst_35 [1] : vector<8x32xf32> to vector<8xf32>
    %112 = vector.shape_cast %111 : vector<8xf32> to vector<8x1xf32>
    %cst_36 = arith.constant 3.200000e+01 : f32
    %113 = vector.broadcast %cst_36 : f32 to vector<8x1xf32>
    %114 = arith.divf %112, %113 : vector<8x1xf32>
    %115 = vector.broadcast %107 : vector<8x1xf32> to vector<8x32xf32>
    %116 = arith.subf %103, %115 : vector<8x32xf32>
    %cst_37 = arith.constant 9.99999974E-6 : f32
    %117 = vector.broadcast %cst_37 : f32 to vector<8x1xf32>
    %118 = arith.addf %114, %117 : vector<8x1xf32>
    %119 = math.rsqrt %118 : vector<8x1xf32>
    %120 = vector.broadcast %119 : vector<8x1xf32> to vector<8x32xf32>
    %121 = arith.mulf %116, %120 : vector<8x32xf32>
    %c0_38 = arith.constant 0 : index
    %c0_39 = arith.constant 0 : index
    %122 = vector.load %arg8[%c0_38, %c0_39] : memref<1x32xf32, #tpu.memory_space<vmem>>, vector<1x32xf32>
    %123 = vector.broadcast %122 : vector<1x32xf32> to vector<8x32xf32>
    %124 = arith.mulf %121, %123 : vector<8x32xf32>
    %c0_40 = arith.constant 0 : index
    %c0_41 = arith.constant 0 : index
    %125 = vector.load %arg9[%c0_40, %c0_41] : memref<1x32xf32, #tpu.memory_space<vmem>>, vector<1x32xf32>
    %126 = vector.broadcast %125 : vector<1x32xf32> to vector<8x32xf32>
    %127 = arith.addf %124, %126 : vector<8x32xf32>
    %128 = arith.truncf %127 : vector<8x32xf32> to vector<8x32xbf16>
    %c0_42 = arith.constant 0 : index
    %c0_43 = arith.constant 0 : index
    %c0_44 = arith.constant 0 : index
    %129 = vector.load %arg10[%c0_42, %c0_43, %c0_44] : memref<1x8x32xbf16, #tpu.memory_space<vmem>>, vector<1x8x32xbf16>
    %130 = vector.shape_cast %129 : vector<1x8x32xbf16> to vector<8x32xbf16>
    %131 = vector.shape_cast %128 : vector<8x32xbf16> to vector<1x8x32xbf16>
    tpu.vector_store %arg10[%c0_42, %c0_43, %c0_44], %131 {strides = array<i32>} : memref<1x8x32xbf16, #tpu.memory_space<vmem>>, vector<1x8x32xbf16>,
    return
  }
  func.func @transform_0(%arg0: i32, %arg1: i32) -> (i32, i32, i32) {
    %c0_i32 = arith.constant 0 : i32
    %c0_i32_0 = arith.constant 0 : i32
    return %arg0, %arg1, %c0_i32 : i32, i32, i32
  }
  func.func @transform_1(%arg0: i32, %arg1: i32) -> (i32, i32, i32) {
    %c0_i32 = arith.constant 0 : i32
    %c0_i32_0 = arith.constant 0 : i32
    %c0_i32_1 = arith.constant 0 : i32
    return %arg0, %c0_i32, %c0_i32_0 : i32, i32, i32
  }
  func.func @transform_2(%arg0: i32, %arg1: i32) -> (i32, i32) {
    %c0_i32 = arith.constant 0 : i32
    %c0_i32_0 = arith.constant 0 : i32
    %c0_i32_1 = arith.constant 0 : i32
    return %c0_i32, %c0_i32_0 : i32, i32
  }
  func.func @transform_3(%arg0: i32, %arg1: i32) -> (i32, i32) {
    %c0_i32 = arith.constant 0 : i32
    %c0_i32_0 = arith.constant 0 : i32
    %c0_i32_1 = arith.constant 0 : i32
    return %c0_i32, %c0_i32_0 : i32, i32
  }
  func.func @transform_4(%arg0: i32, %arg1: i32) -> (i32, i32) {
    %c0_i32 = arith.constant 0 : i32
    %c0_i32_0 = arith.constant 0 : i32
    %c0_i32_1 = arith.constant 0 : i32
    return %c0_i32, %c0_i32_0 : i32, i32
  }
  func.func @transform_5(%arg0: i32, %arg1: i32) -> (i32, i32) {
    %c0_i32 = arith.constant 0 : i32
    %c0_i32_0 = arith.constant 0 : i32
    %c0_i32_1 = arith.constant 0 : i32
    return %c0_i32, %c0_i32_0 : i32, i32
  }
  func.func @transform_6(%arg0: i32, %arg1: i32) -> (i32, i32) {
    %c0_i32 = arith.constant 0 : i32
    %c0_i32_0 = arith.constant 0 : i32
    %c0_i32_1 = arith.constant 0 : i32
    return %c0_i32, %c0_i32_0 : i32, i32
  }
  func.func @transform_7(%arg0: i32, %arg1: i32) -> (i32, i32) {
    %c0_i32 = arith.constant 0 : i32
    %c0_i32_0 = arith.constant 0 : i32
    %c0_i32_1 = arith.constant 0 : i32
    return %c0_i32, %c0_i32_0 : i32, i32
  }
  func.func @transform_8(%arg0: i32, %arg1: i32) -> (i32, i32, i32) {
    %c0_i32 = arith.constant 0 : i32
    %c0_i32_0 = arith.constant 0 : i32
    return %arg0, %arg1, %c0_i32 : i32, i32, i32
  }
}

module attributes {stable_mosaic.version = 11 : i64} {
  func.func @_fused_ffn_kernel(%arg0: i32, %arg1: i32, %arg2: memref<1x8x32xbf16, #tpu.memory_space<vmem>>, %arg3: memref<32x64xbf16, #tpu.memory_space<vmem>>, %arg4: memref<1x64xf32, #tpu.memory_space<vmem>>, %arg5: memref<64x32xbf16, #tpu.memory_space<vmem>>, %arg6: memref<1x32xf32, #tpu.memory_space<vmem>>, %arg7: memref<1x32xf32, #tpu.memory_space<vmem>>, %arg8: memref<1x32xf32, #tpu.memory_space<vmem>>, %arg9: memref<1x8x32xbf16, #tpu.memory_space<vmem>>) attributes {dimension_semantics = [#tpu.dimension_semantics<parallel>, #tpu.dimension_semantics<parallel>], iteration_bounds = array<i64: 2, 1>, scalar_prefetch = 0 : i64, scratch_operands = 0 : i64, tpu.core_type = #tpu.core_type<tc>, window_params = [{transform_indices = @transform_0, window_bounds = array<i64: 1, 8, 32>}, {pipeline_mode = #tpu.pipeline_mode<synchronous>, transform_indices = @transform_1, window_bounds = array<i64: 32, 64>}, {pipeline_mode = #tpu.pipeline_mode<synchronous>, transform_indices = @transform_2, window_bounds = array<i64: 1, 64>}, {pipeline_mode = #tpu.pipeline_mode<synchronous>, transform_indices = @transform_3, window_bounds = array<i64: 64, 32>}, {pipeline_mode = #tpu.pipeline_mode<synchronous>, transform_indices = @transform_4, window_bounds = array<i64: 1, 32>}, {pipeline_mode = #tpu.pipeline_mode<synchronous>, transform_indices = @transform_5, window_bounds = array<i64: 1, 32>}, {pipeline_mode = #tpu.pipeline_mode<synchronous>, transform_indices = @transform_6, window_bounds = array<i64: 1, 32>}, {transform_indices = @transform_7, window_bounds = array<i64: 1, 8, 32>}]} {
    %c0 = arith.constant 0 : index
    %c0_0 = arith.constant 0 : index
    %c0_1 = arith.constant 0 : index
    %0 = vector.load %arg2[%c0, %c0_0, %c0_1] : memref<1x8x32xbf16, #tpu.memory_space<vmem>>, vector<1x8x32xbf16>
    %1 = vector.shape_cast %0 : vector<1x8x32xbf16> to vector<8x32xbf16>
    %2 = arith.extf %1 : vector<8x32xbf16> to vector<8x32xf32>
    %c0_2 = arith.constant 0 : index
    %c0_3 = arith.constant 0 : index
    %3 = vector.load %arg3[%c0_2, %c0_3] : memref<32x64xbf16, #tpu.memory_space<vmem>>, vector<32x64xbf16>
    %cst = arith.constant dense<0.000000e+00> : vector<8x64xf32>
    %4 = tpu.matmul %1, %3, %cst {dimension_numbers = #tpu.dot_dimension_numbers<[1], [0], [0], [1], [0, 0, 1, 1], [], []>} : vector<8x32xbf16>, vector<32x64xbf16>, vector<8x64xf32> -> vector<8x64xf32>
    %c0_4 = arith.constant 0 : index
    %c0_5 = arith.constant 0 : index
    %5 = vector.load %arg4[%c0_4, %c0_5] : memref<1x64xf32, #tpu.memory_space<vmem>>, vector<1x64xf32>
    %6 = vector.broadcast %5 : vector<1x64xf32> to vector<8x64xf32>
    %7 = arith.addf %4, %6 : vector<8x64xf32>
    %cst_6 = arith.constant 0.000000e+00 : f32
    %8 = vector.broadcast %cst_6 : f32 to vector<8x64xf32>
    %9 = arith.maximumf %7, %8 : vector<8x64xf32>
    %10 = arith.truncf %9 : vector<8x64xf32> to vector<8x64xbf16>
    %c0_7 = arith.constant 0 : index
    %c0_8 = arith.constant 0 : index
    %11 = vector.load %arg5[%c0_7, %c0_8] : memref<64x32xbf16, #tpu.memory_space<vmem>>, vector<64x32xbf16>
    %cst_9 = arith.constant dense<0.000000e+00> : vector<8x32xf32>
    %12 = tpu.matmul %10, %11, %cst_9 {dimension_numbers = #tpu.dot_dimension_numbers<[1], [0], [0], [1], [0, 0, 1, 1], [], []>} : vector<8x64xbf16>, vector<64x32xbf16>, vector<8x32xf32> -> vector<8x32xf32>
    %c0_10 = arith.constant 0 : index
    %c0_11 = arith.constant 0 : index
    %13 = vector.load %arg6[%c0_10, %c0_11] : memref<1x32xf32, #tpu.memory_space<vmem>>, vector<1x32xf32>
    %14 = vector.broadcast %13 : vector<1x32xf32> to vector<8x32xf32>
    %15 = arith.addf %12, %14 : vector<8x32xf32>
    %16 = arith.addf %2, %15 : vector<8x32xf32>
    %cst_12 = arith.constant dense<0.000000e+00> : vector<8xf32>
    %17 = vector.multi_reduction <add>, %16, %cst_12 [1] : vector<8x32xf32> to vector<8xf32>
    %18 = vector.shape_cast %17 : vector<8xf32> to vector<8x1xf32>
    %cst_13 = arith.constant 3.200000e+01 : f32
    %19 = vector.broadcast %cst_13 : f32 to vector<8x1xf32>
    %20 = arith.divf %18, %19 : vector<8x1xf32>
    %21 = vector.broadcast %20 : vector<8x1xf32> to vector<8x32xf32>
    %22 = arith.subf %16, %21 : vector<8x32xf32>
    %23 = arith.mulf %22, %22 : vector<8x32xf32>
    %cst_14 = arith.constant dense<0.000000e+00> : vector<8xf32>
    %24 = vector.multi_reduction <add>, %23, %cst_14 [1] : vector<8x32xf32> to vector<8xf32>
    %25 = vector.shape_cast %24 : vector<8xf32> to vector<8x1xf32>
    %cst_15 = arith.constant 3.200000e+01 : f32
    %26 = vector.broadcast %cst_15 : f32 to vector<8x1xf32>
    %27 = arith.divf %25, %26 : vector<8x1xf32>
    %28 = vector.broadcast %20 : vector<8x1xf32> to vector<8x32xf32>
    %29 = arith.subf %16, %28 : vector<8x32xf32>
    %cst_16 = arith.constant 9.99999974E-6 : f32
    %30 = vector.broadcast %cst_16 : f32 to vector<8x1xf32>
    %31 = arith.addf %27, %30 : vector<8x1xf32>
    %32 = math.rsqrt %31 : vector<8x1xf32>
    %33 = vector.broadcast %32 : vector<8x1xf32> to vector<8x32xf32>
    %34 = arith.mulf %29, %33 : vector<8x32xf32>
    %c0_17 = arith.constant 0 : index
    %c0_18 = arith.constant 0 : index
    %35 = vector.load %arg7[%c0_17, %c0_18] : memref<1x32xf32, #tpu.memory_space<vmem>>, vector<1x32xf32>
    %36 = vector.broadcast %35 : vector<1x32xf32> to vector<8x32xf32>
    %37 = arith.mulf %34, %36 : vector<8x32xf32>
    %c0_19 = arith.constant 0 : index
    %c0_20 = arith.constant 0 : index
    %38 = vector.load %arg8[%c0_19, %c0_20] : memref<1x32xf32, #tpu.memory_space<vmem>>, vector<1x32xf32>
    %39 = vector.broadcast %38 : vector<1x32xf32> to vector<8x32xf32>
    %40 = arith.addf %37, %39 : vector<8x32xf32>
    %41 = arith.truncf %40 : vector<8x32xf32> to vector<8x32xbf16>
    %c0_21 = arith.constant 0 : index
    %c0_22 = arith.constant 0 : index
    %c0_23 = arith.constant 0 : index
    %42 = vector.load %arg9[%c0_21, %c0_22, %c0_23] : memref<1x8x32xbf16, #tpu.memory_space<vmem>>, vector<1x8x32xbf16>
    %43 = vector.shape_cast %42 : vector<1x8x32xbf16> to vector<8x32xbf16>
    %44 = vector.shape_cast %41 : vector<8x32xbf16> to vector<1x8x32xbf16>
    tpu.vector_store %arg9[%c0_21, %c0_22, %c0_23], %44 {strides = array<i32>} : memref<1x8x32xbf16, #tpu.memory_space<vmem>>, vector<1x8x32xbf16>,
    return
  }
  func.func @transform_0(%arg0: i32, %arg1: i32) -> (i32, i32, i32) {
    %c0_i32 = arith.constant 0 : i32
    %c0_i32_0 = arith.constant 0 : i32
    return %arg0, %arg1, %c0_i32 : i32, i32, i32
  }
  func.func @transform_1(%arg0: i32, %arg1: i32) -> (i32, i32) {
    %c0_i32 = arith.constant 0 : i32
    %c0_i32_0 = arith.constant 0 : i32
    %c0_i32_1 = arith.constant 0 : i32
    return %c0_i32, %c0_i32_0 : i32, i32
  }
  func.func @transform_2(%arg0: i32, %arg1: i32) -> (i32, i32) {
    %c0_i32 = arith.constant 0 : i32
    %c0_i32_0 = arith.constant 0 : i32
    %c0_i32_1 = arith.constant 0 : i32
    return %c0_i32, %c0_i32_0 : i32, i32
  }
  func.func @transform_3(%arg0: i32, %arg1: i32) -> (i32, i32) {
    %c0_i32 = arith.constant 0 : i32
    %c0_i32_0 = arith.constant 0 : i32
    %c0_i32_1 = arith.constant 0 : i32
    return %c0_i32, %c0_i32_0 : i32, i32
  }
  func.func @transform_4(%arg0: i32, %arg1: i32) -> (i32, i32) {
    %c0_i32 = arith.constant 0 : i32
    %c0_i32_0 = arith.constant 0 : i32
    %c0_i32_1 = arith.constant 0 : i32
    return %c0_i32, %c0_i32_0 : i32, i32
  }
  func.func @transform_5(%arg0: i32, %arg1: i32) -> (i32, i32) {
    %c0_i32 = arith.constant 0 : i32
    %c0_i32_0 = arith.constant 0 : i32
    %c0_i32_1 = arith.constant 0 : i32
    return %c0_i32, %c0_i32_0 : i32, i32
  }
  func.func @transform_6(%arg0: i32, %arg1: i32) -> (i32, i32) {
    %c0_i32 = arith.constant 0 : i32
    %c0_i32_0 = arith.constant 0 : i32
    %c0_i32_1 = arith.constant 0 : i32
    return %c0_i32, %c0_i32_0 : i32, i32
  }
  func.func @transform_7(%arg0: i32, %arg1: i32) -> (i32, i32, i32) {
    %c0_i32 = arith.constant 0 : i32
    %c0_i32_0 = arith.constant 0 : i32
    return %arg0, %arg1, %c0_i32 : i32, i32, i32
  }
}

module attributes {stable_mosaic.version = 11 : i64} {
  func.func @_fused_mha_kernel(%arg0: i32, %arg1: i32, %arg2: memref<1x8x32xbf16, #tpu.memory_space<vmem>>, %arg3: memref<1x8x32xbf16, #tpu.memory_space<vmem>>, %arg4: memref<32x96xbf16, #tpu.memory_space<vmem>>, %arg5: memref<1x96xf32, #tpu.memory_space<vmem>>, %arg6: memref<8x8xbf16, #tpu.memory_space<vmem>>, %arg7: memref<32x32xbf16, #tpu.memory_space<vmem>>, %arg8: memref<1x32xf32, #tpu.memory_space<vmem>>, %arg9: memref<1x32xf32, #tpu.memory_space<vmem>>, %arg10: memref<1x32xf32, #tpu.memory_space<vmem>>, %arg11: memref<1x8x32xbf16, #tpu.memory_space<vmem>>) attributes {dimension_semantics = [#tpu.dimension_semantics<parallel>, #tpu.dimension_semantics<parallel>], iteration_bounds = array<i64: 2, 1>, scalar_prefetch = 0 : i64, scratch_operands = 0 : i64, tpu.core_type = #tpu.core_type<tc>, window_params = [{transform_indices = @transform_0, window_bounds = array<i64: 1, 8, 32>}, {transform_indices = @transform_1, window_bounds = array<i64: 1, 8, 32>}, {pipeline_mode = #tpu.pipeline_mode<synchronous>, transform_indices = @transform_2, window_bounds = array<i64: 32, 96>}, {pipeline_mode = #tpu.pipeline_mode<synchronous>, transform_indices = @transform_3, window_bounds = array<i64: 1, 96>}, {pipeline_mode = #tpu.pipeline_mode<synchronous>, transform_indices = @transform_4, window_bounds = array<i64: 8, 8>}, {pipeline_mode = #tpu.pipeline_mode<synchronous>, transform_indices = @transform_5, window_bounds = array<i64: 32, 32>}, {pipeline_mode = #tpu.pipeline_mode<synchronous>, transform_indices = @transform_6, window_bounds = array<i64: 1, 32>}, {pipeline_mode = #tpu.pipeline_mode<synchronous>, transform_indices = @transform_7, window_bounds = array<i64: 1, 32>}, {pipeline_mode = #tpu.pipeline_mode<synchronous>, transform_indices = @transform_8, window_bounds = array<i64: 1, 32>}, {transform_indices = @transform_9, window_bounds = array<i64: 1, 8, 32>}]} {
    %c0 = arith.constant 0 : index
    %c0_0 = arith.constant 0 : index
    %c0_1 = arith.constant 0 : index
    %0 = vector.load %arg2[%c0, %c0_0, %c0_1] : memref<1x8x32xbf16, #tpu.memory_space<vmem>>, vector<1x8x32xbf16>
    %1 = vector.shape_cast %0 : vector<1x8x32xbf16> to vector<8x32xbf16>
    %c0_2 = arith.constant 0 : index
    %c0_3 = arith.constant 0 : index
    %c0_4 = arith.constant 0 : index
    %2 = vector.load %arg3[%c0_2, %c0_3, %c0_4] : memref<1x8x32xbf16, #tpu.memory_space<vmem>>, vector<1x8x32xbf16>
    %3 = vector.shape_cast %2 : vector<1x8x32xbf16> to vector<8x32xbf16>
    %4 = arith.extf %1 : vector<8x32xbf16> to vector<8x32xf32>
    %c0_5 = arith.constant 0 : index
    %c0_6 = arith.constant 0 : index
    %5 = vector.load %arg5[%c0_5, %c0_6] : memref<1x96xf32, #tpu.memory_space<vmem>>, vector<1x96xf32>
    %c0_7 = arith.constant 0 : index
    %c0_8 = arith.constant 0 : index
    %6 = vector.load %arg4[%c0_7, %c0_8] : memref<32x96xbf16, #tpu.memory_space<vmem>>, vector<32x32xbf16>
    %cst = arith.constant dense<0.000000e+00> : vector<8x32xf32>
    %7 = tpu.matmul %1, %6, %cst {dimension_numbers = #tpu.dot_dimension_numbers<[1], [0], [0], [1], [0, 0, 1, 1], [], []>} : vector<8x32xbf16>, vector<32x32xbf16>, vector<8x32xf32> -> vector<8x32xf32>
    %8 = vector.extract_strided_slice %5 {offsets = [0, 0], sizes = [1, 32], strides = [1, 1]} : vector<1x96xf32> to vector<1x32xf32>
    %9 = vector.broadcast %8 : vector<1x32xf32> to vector<8x32xf32>
    %10 = arith.addf %7, %9 : vector<8x32xf32>
    %c0_9 = arith.constant 0 : index
    %c32 = arith.constant 32 : index
    %11 = vector.load %arg4[%c0_9, %c32] : memref<32x96xbf16, #tpu.memory_space<vmem>>, vector<32x64xbf16>
    %cst_10 = arith.constant dense<0.000000e+00> : vector<8x64xf32>
    %12 = tpu.matmul %3, %11, %cst_10 {dimension_numbers = #tpu.dot_dimension_numbers<[1], [0], [0], [1], [0, 0, 1, 1], [], []>} : vector<8x32xbf16>, vector<32x64xbf16>, vector<8x64xf32> -> vector<8x64xf32>
    %13 = vector.extract_strided_slice %5 {offsets = [0, 32], sizes = [1, 64], strides = [1, 1]} : vector<1x96xf32> to vector<1x64xf32>
    %14 = vector.broadcast %13 : vector<1x64xf32> to vector<8x64xf32>
    %15 = arith.addf %12, %14 : vector<8x64xf32>
    %16 = vector.extract_strided_slice %15 {offsets = [0, 0], sizes = [8, 32], strides = [1, 1]} : vector<8x64xf32> to vector<8x32xf32>
    %17 = vector.extract_strided_slice %15 {offsets = [0, 32], sizes = [8, 32], strides = [1, 1]} : vector<8x64xf32> to vector<8x32xf32>
    %cst_11 = arith.constant 0.353553385 : f32
    %18 = vector.broadcast %cst_11 : f32 to vector<8x32xf32>
    %19 = arith.mulf %10, %18 : vector<8x32xf32>
    %c8_i32 = arith.constant 8 : i32
    %20 = arith.muli %arg1, %c8_i32 : i32
    %21 = tpu.iota {dimensions = array<i32: 0>} : vector<8x8xi32>
    %22 = vector.broadcast %20 : i32 to vector<8x8xi32>
    %23 = arith.addi %22, %21 : vector<8x8xi32>
    %24 = tpu.iota {dimensions = array<i32: 1>} : vector<8x8xi32>
    %c0_12 = arith.constant 0 : index
    %c0_13 = arith.constant 0 : index
    %25 = vector.load %arg6[%c0_12, %c0_13] : memref<8x8xbf16, #tpu.memory_space<vmem>>, vector<8x8xbf16>
    %26 = vector.extract_strided_slice %19 {offsets = [0, 0], sizes = [8, 8], strides = [1, 1]} : vector<8x32xf32> to vector<8x8xf32>
    %27 = arith.truncf %26 : vector<8x8xf32> to vector<8x8xbf16>
    %28 = vector.extract_strided_slice %16 {offsets = [0, 0], sizes = [8, 8], strides = [1, 1]} : vector<8x32xf32> to vector<8x8xf32>
    %29 = arith.truncf %28 : vector<8x8xf32> to vector<8x8xbf16>
    %30 = vector.extract_strided_slice %17 {offsets = [0, 0], sizes = [8, 8], strides = [1, 1]} : vector<8x32xf32> to vector<8x8xf32>
    %31 = arith.truncf %30 : vector<8x8xf32> to vector<8x8xbf16>
    %cst_14 = arith.constant dense<0.000000e+00> : vector<8x8xf32>
    %32 = tpu.matmul %27, %29, %cst_14 {dimension_numbers = #tpu.dot_dimension_numbers<[1], [1], [0], [0], [0, 0, 1, 0], [], []>} : vector<8x8xbf16>, vector<8x8xbf16>, vector<8x8xf32> -> vector<8x8xf32>
    %cst_15 = arith.constant dense<0.000000e+00> : vector<8x8xf32>
    %33 = tpu.matmul %27, %25, %cst_15 {dimension_numbers = #tpu.dot_dimension_numbers<[1], [1], [0], [0], [0, 0, 1, 0], [], []>} : vector<8x8xbf16>, vector<8x8xbf16>, vector<8x8xf32> -> vector<8x8xf32>
    %34 = vector.extract_strided_slice %23 {offsets = [0, 0], sizes = [8, 1], strides = [1, 1]} : vector<8x8xi32> to vector<8x1xi32>
    %c1_i32 = arith.constant 1 : i32
    %35 = vector.broadcast %c1_i32 : i32 to vector<8x1xi32>
    %36 = arith.addi %34, %35 : vector<8x1xi32>
    %c8_i32_16 = arith.constant 8 : i32
    %c0_i32 = arith.constant 0 : i32
    %37 = arith.cmpi eq, %c8_i32_16, %c0_i32 : i32
    %c1_i32_17 = arith.constant 1 : i32
    %38 = arith.select %37, %c1_i32_17, %c8_i32_16 : i32
    %39 = vector.broadcast %38 : i32 to vector<8x1xi32>
    %40 = arith.remsi %36, %39 : vector<8x1xi32>
    %c0_i32_18 = arith.constant 0 : i32
    %41 = vector.broadcast %c0_i32_18 : i32 to vector<8x1xi32>
    %42 = arith.cmpi ne, %40, %41 : vector<8x1xi32>
    %c0_i32_19 = arith.constant 0 : i32
    %43 = vector.broadcast %c0_i32_19 : i32 to vector<8x1xi32>
    %44 = arith.cmpi slt, %40, %43 : vector<8x1xi32>
    %c0_i32_20 = arith.constant 0 : i32
    %45 = arith.cmpi slt, %38, %c0_i32_20 : i32
    %46 = vector.broadcast %45 : i1 to vector<8x1xi1>
    %47 = vector.broadcast %46 : vector<8x1xi1> to vector<8x1xi1>
    %48 = arith.xori %44, %47 : vector<8x1xi1>
    %49 = arith.andi %48, %42 : vector<8x1xi1>
    %50 = vector.broadcast %38 : i32 to vector<8x1xi32>
    %51 = arith.addi %40, %50 : vector<8x1xi32>
    %52 = arith.select %49, %51, %40 : vector<8x1xi1>, vector<8x1xi32>
    %53 = vector.extract_strided_slice %33 {offsets = [0, 7], sizes = [8, 1], strides = [1, 1]} : vector<8x8xf32> to vector<8x1xf32>
    %54 = vector.extract_strided_slice %33 {offsets = [0, 0], sizes = [8, 7], strides = [1, 1]} : vector<8x8xf32> to vector<8x7xf32>
    %55 = tpu.concatenate %53, %54 in 1 : vector<8x1xf32>, vector<8x7xf32> -> vector<8x8xf32>
    %c0_i32_21 = arith.constant 0 : i32
    %56 = vector.broadcast %c0_i32_21 : i32 to vector<8x1xi32>
    %57 = arith.shrsi %52, %56 : vector<8x1xi32>
    %c1_i32_22 = arith.constant 1 : i32
    %58 = vector.broadcast %c1_i32_22 : i32 to vector<8x1xi32>
    %59 = arith.andi %57, %58 : vector<8x1xi32>
    %c0_i32_23 = arith.constant 0 : i32
    %60 = vector.broadcast %c0_i32_23 : i32 to vector<8x1xi32>
    %61 = arith.cmpi ne, %59, %60 : vector<8x1xi32>
    %62 = vector.shape_cast %61 : vector<8x1xi1> to vector<8x1xi1>
    %63 = vector.broadcast %62 : vector<8x1xi1> to vector<8x8xi1>
    %64 = arith.select %63, %55, %33 : vector<8x8xi1>, vector<8x8xf32>
    %65 = vector.extract_strided_slice %64 {offsets = [0, 6], sizes = [8, 2], strides = [1, 1]} : vector<8x8xf32> to vector<8x2xf32>
    %66 = vector.extract_strided_slice %64 {offsets = [0, 0], sizes = [8, 6], strides = [1, 1]} : vector<8x8xf32> to vector<8x6xf32>
    %67 = tpu.concatenate %65, %66 in 1 : vector<8x2xf32>, vector<8x6xf32> -> vector<8x8xf32>
    %c1_i32_24 = arith.constant 1 : i32
    %68 = vector.broadcast %c1_i32_24 : i32 to vector<8x1xi32>
    %69 = arith.shrsi %52, %68 : vector<8x1xi32>
    %c1_i32_25 = arith.constant 1 : i32
    %70 = vector.broadcast %c1_i32_25 : i32 to vector<8x1xi32>
    %71 = arith.andi %69, %70 : vector<8x1xi32>
    %c0_i32_26 = arith.constant 0 : i32
    %72 = vector.broadcast %c0_i32_26 : i32 to vector<8x1xi32>
    %73 = arith.cmpi ne, %71, %72 : vector<8x1xi32>
    %74 = vector.shape_cast %73 : vector<8x1xi1> to vector<8x1xi1>
    %75 = vector.broadcast %74 : vector<8x1xi1> to vector<8x8xi1>
    %76 = arith.select %75, %67, %64 : vector<8x8xi1>, vector<8x8xf32>
    %77 = vector.extract_strided_slice %76 {offsets = [0, 4], sizes = [8, 4], strides = [1, 1]} : vector<8x8xf32> to vector<8x4xf32>
    %78 = vector.extract_strided_slice %76 {offsets = [0, 0], sizes = [8, 4], strides = [1, 1]} : vector<8x8xf32> to vector<8x4xf32>
    %79 = tpu.concatenate %77, %78 in 1 : vector<8x4xf32>, vector<8x4xf32> -> vector<8x8xf32>
    %c2_i32 = arith.constant 2 : i32
    %80 = vector.broadcast %c2_i32 : i32 to vector<8x1xi32>
    %81 = arith.shrsi %52, %80 : vector<8x1xi32>
    %c1_i32_27 = arith.constant 1 : i32
    %82 = vector.broadcast %c1_i32_27 : i32 to vector<8x1xi32>
    %83 = arith.andi %81, %82 : vector<8x1xi32>
    %c0_i32_28 = arith.constant 0 : i32
    %84 = vector.broadcast %c0_i32_28 : i32 to vector<8x1xi32>
    %85 = arith.cmpi ne, %83, %84 : vector<8x1xi32>
    %86 = vector.shape_cast %85 : vector<8x1xi1> to vector<8x1xi1>
    %87 = vector.broadcast %86 : vector<8x1xi1> to vector<8x8xi1>
    %88 = arith.select %87, %79, %76 : vector<8x8xi1>, vector<8x8xf32>
    %89 = arith.cmpi sge, %23, %24 : vector<8x8xi32>
    %cst_29 = arith.constant 0.000000e+00 : f32
    %90 = vector.broadcast %cst_29 : f32 to vector<8x8xf32>
    %91 = arith.select %89, %88, %90 : vector<8x8xi1>, vector<8x8xf32>
    %92 = arith.addf %32, %91 : vector<8x8xf32>
    %93 = arith.cmpi sge, %23, %24 : vector<8x8xi32>
    %cst_30 = arith.constant -1.000000e+30 : f32
    %94 = vector.broadcast %cst_30 : f32 to vector<8x8xf32>
    %95 = arith.select %93, %92, %94 : vector<8x8xi1>, vector<8x8xf32>
    %cst_31 = arith.constant dense<0xFF800000> : vector<8xf32>
    %96 = vector.multi_reduction <maximumf>, %95, %cst_31 [1] : vector<8x8xf32> to vector<8xf32>
    %97 = vector.shape_cast %96 : vector<8xf32> to vector<8x1xf32>
    %98 = vector.broadcast %97 : vector<8x1xf32> to vector<8x8xf32>
    %99 = arith.subf %95, %98 : vector<8x8xf32>
    %100 = math.exp %99 : vector<8x8xf32>
    %cst_32 = arith.constant dense<0.000000e+00> : vector<8xf32>
    %101 = vector.multi_reduction <add>, %100, %cst_32 [1] : vector<8x8xf32> to vector<8xf32>
    %102 = vector.shape_cast %101 : vector<8xf32> to vector<8x1xf32>
    %103 = arith.truncf %100 : vector<8x8xf32> to vector<8x8xbf16>
    %cst_33 = arith.constant dense<0.000000e+00> : vector<8x8xf32>
    %104 = tpu.matmul %103, %31, %cst_33 {dimension_numbers = #tpu.dot_dimension_numbers<[1], [0], [0], [1], [0, 0, 1, 1], [], []>} : vector<8x8xbf16>, vector<8x8xbf16>, vector<8x8xf32> -> vector<8x8xf32>
    %105 = tpu.reciprocal %102 {approx = true} : vector<8x1xf32> -> vector<8x1xf32>
    %106 = vector.broadcast %105 : vector<8x1xf32> to vector<8x8xf32>
    %107 = arith.mulf %104, %106 : vector<8x8xf32>
    %108 = vector.extract_strided_slice %19 {offsets = [0, 8], sizes = [8, 8], strides = [1, 1]} : vector<8x32xf32> to vector<8x8xf32>
    %109 = arith.truncf %108 : vector<8x8xf32> to vector<8x8xbf16>
    %110 = vector.extract_strided_slice %16 {offsets = [0, 8], sizes = [8, 8], strides = [1, 1]} : vector<8x32xf32> to vector<8x8xf32>
    %111 = arith.truncf %110 : vector<8x8xf32> to vector<8x8xbf16>
    %112 = vector.extract_strided_slice %17 {offsets = [0, 8], sizes = [8, 8], strides = [1, 1]} : vector<8x32xf32> to vector<8x8xf32>
    %113 = arith.truncf %112 : vector<8x8xf32> to vector<8x8xbf16>
    %cst_34 = arith.constant dense<0.000000e+00> : vector<8x8xf32>
    %114 = tpu.matmul %109, %111, %cst_34 {dimension_numbers = #tpu.dot_dimension_numbers<[1], [1], [0], [0], [0, 0, 1, 0], [], []>} : vector<8x8xbf16>, vector<8x8xbf16>, vector<8x8xf32> -> vector<8x8xf32>
    %cst_35 = arith.constant dense<0.000000e+00> : vector<8x8xf32>
    %115 = tpu.matmul %109, %25, %cst_35 {dimension_numbers = #tpu.dot_dimension_numbers<[1], [1], [0], [0], [0, 0, 1, 0], [], []>} : vector<8x8xbf16>, vector<8x8xbf16>, vector<8x8xf32> -> vector<8x8xf32>
    %116 = vector.extract_strided_slice %23 {offsets = [0, 0], sizes = [8, 1], strides = [1, 1]} : vector<8x8xi32> to vector<8x1xi32>
    %c1_i32_36 = arith.constant 1 : i32
    %117 = vector.broadcast %c1_i32_36 : i32 to vector<8x1xi32>
    %118 = arith.addi %116, %117 : vector<8x1xi32>
    %c8_i32_37 = arith.constant 8 : i32
    %c0_i32_38 = arith.constant 0 : i32
    %119 = arith.cmpi eq, %c8_i32_37, %c0_i32_38 : i32
    %c1_i32_39 = arith.constant 1 : i32
    %120 = arith.select %119, %c1_i32_39, %c8_i32_37 : i32
    %121 = vector.broadcast %120 : i32 to vector<8x1xi32>
    %122 = arith.remsi %118, %121 : vector<8x1xi32>
    %c0_i32_40 = arith.constant 0 : i32
    %123 = vector.broadcast %c0_i32_40 : i32 to vector<8x1xi32>
    %124 = arith.cmpi ne, %122, %123 : vector<8x1xi32>
    %c0_i32_41 = arith.constant 0 : i32
    %125 = vector.broadcast %c0_i32_41 : i32 to vector<8x1xi32>
    %126 = arith.cmpi slt, %122, %125 : vector<8x1xi32>
    %c0_i32_42 = arith.constant 0 : i32
    %127 = arith.cmpi slt, %120, %c0_i32_42 : i32
    %128 = vector.broadcast %127 : i1 to vector<8x1xi1>
    %129 = vector.broadcast %128 : vector<8x1xi1> to vector<8x1xi1>
    %130 = arith.xori %126, %129 : vector<8x1xi1>
    %131 = arith.andi %130, %124 : vector<8x1xi1>
    %132 = vector.broadcast %120 : i32 to vector<8x1xi32>
    %133 = arith.addi %122, %132 : vector<8x1xi32>
    %134 = arith.select %131, %133, %122 : vector<8x1xi1>, vector<8x1xi32>
    %135 = vector.extract_strided_slice %115 {offsets = [0, 7], sizes = [8, 1], strides = [1, 1]} : vector<8x8xf32> to vector<8x1xf32>
    %136 = vector.extract_strided_slice %115 {offsets = [0, 0], sizes = [8, 7], strides = [1, 1]} : vector<8x8xf32> to vector<8x7xf32>
    %137 = tpu.concatenate %135, %136 in 1 : vector<8x1xf32>, vector<8x7xf32> -> vector<8x8xf32>
    %c0_i32_43 = arith.constant 0 : i32
    %138 = vector.broadcast %c0_i32_43 : i32 to vector<8x1xi32>
    %139 = arith.shrsi %134, %138 : vector<8x1xi32>
    %c1_i32_44 = arith.constant 1 : i32
    %140 = vector.broadcast %c1_i32_44 : i32 to vector<8x1xi32>
    %141 = arith.andi %139, %140 : vector<8x1xi32>
    %c0_i32_45 = arith.constant 0 : i32
    %142 = vector.broadcast %c0_i32_45 : i32 to vector<8x1xi32>
    %143 = arith.cmpi ne, %141, %142 : vector<8x1xi32>
    %144 = vector.shape_cast %143 : vector<8x1xi1> to vector<8x1xi1>
    %145 = vector.broadcast %144 : vector<8x1xi1> to vector<8x8xi1>
    %146 = arith.select %145, %137, %115 : vector<8x8xi1>, vector<8x8xf32>
    %147 = vector.extract_strided_slice %146 {offsets = [0, 6], sizes = [8, 2], strides = [1, 1]} : vector<8x8xf32> to vector<8x2xf32>
    %148 = vector.extract_strided_slice %146 {offsets = [0, 0], sizes = [8, 6], strides = [1, 1]} : vector<8x8xf32> to vector<8x6xf32>
    %149 = tpu.concatenate %147, %148 in 1 : vector<8x2xf32>, vector<8x6xf32> -> vector<8x8xf32>
    %c1_i32_46 = arith.constant 1 : i32
    %150 = vector.broadcast %c1_i32_46 : i32 to vector<8x1xi32>
    %151 = arith.shrsi %134, %150 : vector<8x1xi32>
    %c1_i32_47 = arith.constant 1 : i32
    %152 = vector.broadcast %c1_i32_47 : i32 to vector<8x1xi32>
    %153 = arith.andi %151, %152 : vector<8x1xi32>
    %c0_i32_48 = arith.constant 0 : i32
    %154 = vector.broadcast %c0_i32_48 : i32 to vector<8x1xi32>
    %155 = arith.cmpi ne, %153, %154 : vector<8x1xi32>
    %156 = vector.shape_cast %155 : vector<8x1xi1> to vector<8x1xi1>
    %157 = vector.broadcast %156 : vector<8x1xi1> to vector<8x8xi1>
    %158 = arith.select %157, %149, %146 : vector<8x8xi1>, vector<8x8xf32>
    %159 = vector.extract_strided_slice %158 {offsets = [0, 4], sizes = [8, 4], strides = [1, 1]} : vector<8x8xf32> to vector<8x4xf32>
    %160 = vector.extract_strided_slice %158 {offsets = [0, 0], sizes = [8, 4], strides = [1, 1]} : vector<8x8xf32> to vector<8x4xf32>
    %161 = tpu.concatenate %159, %160 in 1 : vector<8x4xf32>, vector<8x4xf32> -> vector<8x8xf32>
    %c2_i32_49 = arith.constant 2 : i32
    %162 = vector.broadcast %c2_i32_49 : i32 to vector<8x1xi32>
    %163 = arith.shrsi %134, %162 : vector<8x1xi32>
    %c1_i32_50 = arith.constant 1 : i32
    %164 = vector.broadcast %c1_i32_50 : i32 to vector<8x1xi32>
    %165 = arith.andi %163, %164 : vector<8x1xi32>
    %c0_i32_51 = arith.constant 0 : i32
    %166 = vector.broadcast %c0_i32_51 : i32 to vector<8x1xi32>
    %167 = arith.cmpi ne, %165, %166 : vector<8x1xi32>
    %168 = vector.shape_cast %167 : vector<8x1xi1> to vector<8x1xi1>
    %169 = vector.broadcast %168 : vector<8x1xi1> to vector<8x8xi1>
    %170 = arith.select %169, %161, %158 : vector<8x8xi1>, vector<8x8xf32>
    %171 = arith.cmpi sge, %23, %24 : vector<8x8xi32>
    %cst_52 = arith.constant 0.000000e+00 : f32
    %172 = vector.broadcast %cst_52 : f32 to vector<8x8xf32>
    %173 = arith.select %171, %170, %172 : vector<8x8xi1>, vector<8x8xf32>
    %174 = arith.addf %114, %173 : vector<8x8xf32>
    %175 = arith.cmpi sge, %23, %24 : vector<8x8xi32>
    %cst_53 = arith.constant -1.000000e+30 : f32
    %176 = vector.broadcast %cst_53 : f32 to vector<8x8xf32>
    %177 = arith.select %175, %174, %176 : vector<8x8xi1>, vector<8x8xf32>
    %cst_54 = arith.constant dense<0xFF800000> : vector<8xf32>
    %178 = vector.multi_reduction <maximumf>, %177, %cst_54 [1] : vector<8x8xf32> to vector<8xf32>
    %179 = vector.shape_cast %178 : vector<8xf32> to vector<8x1xf32>
    %180 = vector.broadcast %179 : vector<8x1xf32> to vector<8x8xf32>
    %181 = arith.subf %177, %180 : vector<8x8xf32>
    %182 = math.exp %181 : vector<8x8xf32>
    %cst_55 = arith.constant dense<0.000000e+00> : vector<8xf32>
    %183 = vector.multi_reduction <add>, %182, %cst_55 [1] : vector<8x8xf32> to vector<8xf32>
    %184 = vector.shape_cast %183 : vector<8xf32> to vector<8x1xf32>
    %185 = arith.truncf %182 : vector<8x8xf32> to vector<8x8xbf16>
    %cst_56 = arith.constant dense<0.000000e+00> : vector<8x8xf32>
    %186 = tpu.matmul %185, %113, %cst_56 {dimension_numbers = #tpu.dot_dimension_numbers<[1], [0], [0], [1], [0, 0, 1, 1], [], []>} : vector<8x8xbf16>, vector<8x8xbf16>, vector<8x8xf32> -> vector<8x8xf32>
    %187 = tpu.reciprocal %184 {approx = true} : vector<8x1xf32> -> vector<8x1xf32>
    %188 = vector.broadcast %187 : vector<8x1xf32> to vector<8x8xf32>
    %189 = arith.mulf %186, %188 : vector<8x8xf32>
    %190 = vector.extract_strided_slice %19 {offsets = [0, 16], sizes = [8, 8], strides = [1, 1]} : vector<8x32xf32> to vector<8x8xf32>
    %191 = arith.truncf %190 : vector<8x8xf32> to vector<8x8xbf16>
    %192 = vector.extract_strided_slice %16 {offsets = [0, 16], sizes = [8, 8], strides = [1, 1]} : vector<8x32xf32> to vector<8x8xf32>
    %193 = arith.truncf %192 : vector<8x8xf32> to vector<8x8xbf16>
    %194 = vector.extract_strided_slice %17 {offsets = [0, 16], sizes = [8, 8], strides = [1, 1]} : vector<8x32xf32> to vector<8x8xf32>
    %195 = arith.truncf %194 : vector<8x8xf32> to vector<8x8xbf16>
    %cst_57 = arith.constant dense<0.000000e+00> : vector<8x8xf32>
    %196 = tpu.matmul %191, %193, %cst_57 {dimension_numbers = #tpu.dot_dimension_numbers<[1], [1], [0], [0], [0, 0, 1, 0], [], []>} : vector<8x8xbf16>, vector<8x8xbf16>, vector<8x8xf32> -> vector<8x8xf32>
    %cst_58 = arith.constant dense<0.000000e+00> : vector<8x8xf32>
    %197 = tpu.matmul %191, %25, %cst_58 {dimension_numbers = #tpu.dot_dimension_numbers<[1], [1], [0], [0], [0, 0, 1, 0], [], []>} : vector<8x8xbf16>, vector<8x8xbf16>, vector<8x8xf32> -> vector<8x8xf32>
    %198 = vector.extract_strided_slice %23 {offsets = [0, 0], sizes = [8, 1], strides = [1, 1]} : vector<8x8xi32> to vector<8x1xi32>
    %c1_i32_59 = arith.constant 1 : i32
    %199 = vector.broadcast %c1_i32_59 : i32 to vector<8x1xi32>
    %200 = arith.addi %198, %199 : vector<8x1xi32>
    %c8_i32_60 = arith.constant 8 : i32
    %c0_i32_61 = arith.constant 0 : i32
    %201 = arith.cmpi eq, %c8_i32_60, %c0_i32_61 : i32
    %c1_i32_62 = arith.constant 1 : i32
    %202 = arith.select %201, %c1_i32_62, %c8_i32_60 : i32
    %203 = vector.broadcast %202 : i32 to vector<8x1xi32>
    %204 = arith.remsi %200, %203 : vector<8x1xi32>
    %c0_i32_63 = arith.constant 0 : i32
    %205 = vector.broadcast %c0_i32_63 : i32 to vector<8x1xi32>
    %206 = arith.cmpi ne, %204, %205 : vector<8x1xi32>
    %c0_i32_64 = arith.constant 0 : i32
    %207 = vector.broadcast %c0_i32_64 : i32 to vector<8x1xi32>
    %208 = arith.cmpi slt, %204, %207 : vector<8x1xi32>
    %c0_i32_65 = arith.constant 0 : i32
    %209 = arith.cmpi slt, %202, %c0_i32_65 : i32
    %210 = vector.broadcast %209 : i1 to vector<8x1xi1>
    %211 = vector.broadcast %210 : vector<8x1xi1> to vector<8x1xi1>
    %212 = arith.xori %208, %211 : vector<8x1xi1>
    %213 = arith.andi %212, %206 : vector<8x1xi1>
    %214 = vector.broadcast %202 : i32 to vector<8x1xi32>
    %215 = arith.addi %204, %214 : vector<8x1xi32>
    %216 = arith.select %213, %215, %204 : vector<8x1xi1>, vector<8x1xi32>
    %217 = vector.extract_strided_slice %197 {offsets = [0, 7], sizes = [8, 1], strides = [1, 1]} : vector<8x8xf32> to vector<8x1xf32>
    %218 = vector.extract_strided_slice %197 {offsets = [0, 0], sizes = [8, 7], strides = [1, 1]} : vector<8x8xf32> to vector<8x7xf32>
    %219 = tpu.concatenate %217, %218 in 1 : vector<8x1xf32>, vector<8x7xf32> -> vector<8x8xf32>
    %c0_i32_66 = arith.constant 0 : i32
    %220 = vector.broadcast %c0_i32_66 : i32 to vector<8x1xi32>
    %221 = arith.shrsi %216, %220 : vector<8x1xi32>
    %c1_i32_67 = arith.constant 1 : i32
    %222 = vector.broadcast %c1_i32_67 : i32 to vector<8x1xi32>
    %223 = arith.andi %221, %222 : vector<8x1xi32>
    %c0_i32_68 = arith.constant 0 : i32
    %224 = vector.broadcast %c0_i32_68 : i32 to vector<8x1xi32>
    %225 = arith.cmpi ne, %223, %224 : vector<8x1xi32>
    %226 = vector.shape_cast %225 : vector<8x1xi1> to vector<8x1xi1>
    %227 = vector.broadcast %226 : vector<8x1xi1> to vector<8x8xi1>
    %228 = arith.select %227, %219, %197 : vector<8x8xi1>, vector<8x8xf32>
    %229 = vector.extract_strided_slice %228 {offsets = [0, 6], sizes = [8, 2], strides = [1, 1]} : vector<8x8xf32> to vector<8x2xf32>
    %230 = vector.extract_strided_slice %228 {offsets = [0, 0], sizes = [8, 6], strides = [1, 1]} : vector<8x8xf32> to vector<8x6xf32>
    %231 = tpu.concatenate %229, %230 in 1 : vector<8x2xf32>, vector<8x6xf32> -> vector<8x8xf32>
    %c1_i32_69 = arith.constant 1 : i32
    %232 = vector.broadcast %c1_i32_69 : i32 to vector<8x1xi32>
    %233 = arith.shrsi %216, %232 : vector<8x1xi32>
    %c1_i32_70 = arith.constant 1 : i32
    %234 = vector.broadcast %c1_i32_70 : i32 to vector<8x1xi32>
    %235 = arith.andi %233, %234 : vector<8x1xi32>
    %c0_i32_71 = arith.constant 0 : i32
    %236 = vector.broadcast %c0_i32_71 : i32 to vector<8x1xi32>
    %237 = arith.cmpi ne, %235, %236 : vector<8x1xi32>
    %238 = vector.shape_cast %237 : vector<8x1xi1> to vector<8x1xi1>
    %239 = vector.broadcast %238 : vector<8x1xi1> to vector<8x8xi1>
    %240 = arith.select %239, %231, %228 : vector<8x8xi1>, vector<8x8xf32>
    %241 = vector.extract_strided_slice %240 {offsets = [0, 4], sizes = [8, 4], strides = [1, 1]} : vector<8x8xf32> to vector<8x4xf32>
    %242 = vector.extract_strided_slice %240 {offsets = [0, 0], sizes = [8, 4], strides = [1, 1]} : vector<8x8xf32> to vector<8x4xf32>
    %243 = tpu.concatenate %241, %242 in 1 : vector<8x4xf32>, vector<8x4xf32> -> vector<8x8xf32>
    %c2_i32_72 = arith.constant 2 : i32
    %244 = vector.broadcast %c2_i32_72 : i32 to vector<8x1xi32>
    %245 = arith.shrsi %216, %244 : vector<8x1xi32>
    %c1_i32_73 = arith.constant 1 : i32
    %246 = vector.broadcast %c1_i32_73 : i32 to vector<8x1xi32>
    %247 = arith.andi %245, %246 : vector<8x1xi32>
    %c0_i32_74 = arith.constant 0 : i32
    %248 = vector.broadcast %c0_i32_74 : i32 to vector<8x1xi32>
    %249 = arith.cmpi ne, %247, %248 : vector<8x1xi32>
    %250 = vector.shape_cast %249 : vector<8x1xi1> to vector<8x1xi1>
    %251 = vector.broadcast %250 : vector<8x1xi1> to vector<8x8xi1>
    %252 = arith.select %251, %243, %240 : vector<8x8xi1>, vector<8x8xf32>
    %253 = arith.cmpi sge, %23, %24 : vector<8x8xi32>
    %cst_75 = arith.constant 0.000000e+00 : f32
    %254 = vector.broadcast %cst_75 : f32 to vector<8x8xf32>
    %255 = arith.select %253, %252, %254 : vector<8x8xi1>, vector<8x8xf32>
    %256 = arith.addf %196, %255 : vector<8x8xf32>
    %257 = arith.cmpi sge, %23, %24 : vector<8x8xi32>
    %cst_76 = arith.constant -1.000000e+30 : f32
    %258 = vector.broadcast %cst_76 : f32 to vector<8x8xf32>
    %259 = arith.select %257, %256, %258 : vector<8x8xi1>, vector<8x8xf32>
    %cst_77 = arith.constant dense<0xFF800000> : vector<8xf32>
    %260 = vector.multi_reduction <maximumf>, %259, %cst_77 [1] : vector<8x8xf32> to vector<8xf32>
    %261 = vector.shape_cast %260 : vector<8xf32> to vector<8x1xf32>
    %262 = vector.broadcast %261 : vector<8x1xf32> to vector<8x8xf32>
    %263 = arith.subf %259, %262 : vector<8x8xf32>
    %264 = math.exp %263 : vector<8x8xf32>
    %cst_78 = arith.constant dense<0.000000e+00> : vector<8xf32>
    %265 = vector.multi_reduction <add>, %264, %cst_78 [1] : vector<8x8xf32> to vector<8xf32>
    %266 = vector.shape_cast %265 : vector<8xf32> to vector<8x1xf32>
    %267 = arith.truncf %264 : vector<8x8xf32> to vector<8x8xbf16>
    %cst_79 = arith.constant dense<0.000000e+00> : vector<8x8xf32>
    %268 = tpu.matmul %267, %195, %cst_79 {dimension_numbers = #tpu.dot_dimension_numbers<[1], [0], [0], [1], [0, 0, 1, 1], [], []>} : vector<8x8xbf16>, vector<8x8xbf16>, vector<8x8xf32> -> vector<8x8xf32>
    %269 = tpu.reciprocal %266 {approx = true} : vector<8x1xf32> -> vector<8x1xf32>
    %270 = vector.broadcast %269 : vector<8x1xf32> to vector<8x8xf32>
    %271 = arith.mulf %268, %270 : vector<8x8xf32>
    %272 = vector.extract_strided_slice %19 {offsets = [0, 24], sizes = [8, 8], strides = [1, 1]} : vector<8x32xf32> to vector<8x8xf32>
    %273 = arith.truncf %272 : vector<8x8xf32> to vector<8x8xbf16>
    %274 = vector.extract_strided_slice %16 {offsets = [0, 24], sizes = [8, 8], strides = [1, 1]} : vector<8x32xf32> to vector<8x8xf32>
    %275 = arith.truncf %274 : vector<8x8xf32> to vector<8x8xbf16>
    %276 = vector.extract_strided_slice %17 {offsets = [0, 24], sizes = [8, 8], strides = [1, 1]} : vector<8x32xf32> to vector<8x8xf32>
    %277 = arith.truncf %276 : vector<8x8xf32> to vector<8x8xbf16>
    %cst_80 = arith.constant dense<0.000000e+00> : vector<8x8xf32>
    %278 = tpu.matmul %273, %275, %cst_80 {dimension_numbers = #tpu.dot_dimension_numbers<[1], [1], [0], [0], [0, 0, 1, 0], [], []>} : vector<8x8xbf16>, vector<8x8xbf16>, vector<8x8xf32> -> vector<8x8xf32>
    %cst_81 = arith.constant dense<0.000000e+00> : vector<8x8xf32>
    %279 = tpu.matmul %273, %25, %cst_81 {dimension_numbers = #tpu.dot_dimension_numbers<[1], [1], [0], [0], [0, 0, 1, 0], [], []>} : vector<8x8xbf16>, vector<8x8xbf16>, vector<8x8xf32> -> vector<8x8xf32>
    %280 = vector.extract_strided_slice %23 {offsets = [0, 0], sizes = [8, 1], strides = [1, 1]} : vector<8x8xi32> to vector<8x1xi32>
    %c1_i32_82 = arith.constant 1 : i32
    %281 = vector.broadcast %c1_i32_82 : i32 to vector<8x1xi32>
    %282 = arith.addi %280, %281 : vector<8x1xi32>
    %c8_i32_83 = arith.constant 8 : i32
    %c0_i32_84 = arith.constant 0 : i32
    %283 = arith.cmpi eq, %c8_i32_83, %c0_i32_84 : i32
    %c1_i32_85 = arith.constant 1 : i32
    %284 = arith.select %283, %c1_i32_85, %c8_i32_83 : i32
    %285 = vector.broadcast %284 : i32 to vector<8x1xi32>
    %286 = arith.remsi %282, %285 : vector<8x1xi32>
    %c0_i32_86 = arith.constant 0 : i32
    %287 = vector.broadcast %c0_i32_86 : i32 to vector<8x1xi32>
    %288 = arith.cmpi ne, %286, %287 : vector<8x1xi32>
    %c0_i32_87 = arith.constant 0 : i32
    %289 = vector.broadcast %c0_i32_87 : i32 to vector<8x1xi32>
    %290 = arith.cmpi slt, %286, %289 : vector<8x1xi32>
    %c0_i32_88 = arith.constant 0 : i32
    %291 = arith.cmpi slt, %284, %c0_i32_88 : i32
    %292 = vector.broadcast %291 : i1 to vector<8x1xi1>
    %293 = vector.broadcast %292 : vector<8x1xi1> to vector<8x1xi1>
    %294 = arith.xori %290, %293 : vector<8x1xi1>
    %295 = arith.andi %294, %288 : vector<8x1xi1>
    %296 = vector.broadcast %284 : i32 to vector<8x1xi32>
    %297 = arith.addi %286, %296 : vector<8x1xi32>
    %298 = arith.select %295, %297, %286 : vector<8x1xi1>, vector<8x1xi32>
    %299 = vector.extract_strided_slice %279 {offsets = [0, 7], sizes = [8, 1], strides = [1, 1]} : vector<8x8xf32> to vector<8x1xf32>
    %300 = vector.extract_strided_slice %279 {offsets = [0, 0], sizes = [8, 7], strides = [1, 1]} : vector<8x8xf32> to vector<8x7xf32>
    %301 = tpu.concatenate %299, %300 in 1 : vector<8x1xf32>, vector<8x7xf32> -> vector<8x8xf32>
    %c0_i32_89 = arith.constant 0 : i32
    %302 = vector.broadcast %c0_i32_89 : i32 to vector<8x1xi32>
    %303 = arith.shrsi %298, %302 : vector<8x1xi32>
    %c1_i32_90 = arith.constant 1 : i32
    %304 = vector.broadcast %c1_i32_90 : i32 to vector<8x1xi32>
    %305 = arith.andi %303, %304 : vector<8x1xi32>
    %c0_i32_91 = arith.constant 0 : i32
    %306 = vector.broadcast %c0_i32_91 : i32 to vector<8x1xi32>
    %307 = arith.cmpi ne, %305, %306 : vector<8x1xi32>
    %308 = vector.shape_cast %307 : vector<8x1xi1> to vector<8x1xi1>
    %309 = vector.broadcast %308 : vector<8x1xi1> to vector<8x8xi1>
    %310 = arith.select %309, %301, %279 : vector<8x8xi1>, vector<8x8xf32>
    %311 = vector.extract_strided_slice %310 {offsets = [0, 6], sizes = [8, 2], strides = [1, 1]} : vector<8x8xf32> to vector<8x2xf32>
    %312 = vector.extract_strided_slice %310 {offsets = [0, 0], sizes = [8, 6], strides = [1, 1]} : vector<8x8xf32> to vector<8x6xf32>
    %313 = tpu.concatenate %311, %312 in 1 : vector<8x2xf32>, vector<8x6xf32> -> vector<8x8xf32>
    %c1_i32_92 = arith.constant 1 : i32
    %314 = vector.broadcast %c1_i32_92 : i32 to vector<8x1xi32>
    %315 = arith.shrsi %298, %314 : vector<8x1xi32>
    %c1_i32_93 = arith.constant 1 : i32
    %316 = vector.broadcast %c1_i32_93 : i32 to vector<8x1xi32>
    %317 = arith.andi %315, %316 : vector<8x1xi32>
    %c0_i32_94 = arith.constant 0 : i32
    %318 = vector.broadcast %c0_i32_94 : i32 to vector<8x1xi32>
    %319 = arith.cmpi ne, %317, %318 : vector<8x1xi32>
    %320 = vector.shape_cast %319 : vector<8x1xi1> to vector<8x1xi1>
    %321 = vector.broadcast %320 : vector<8x1xi1> to vector<8x8xi1>
    %322 = arith.select %321, %313, %310 : vector<8x8xi1>, vector<8x8xf32>
    %323 = vector.extract_strided_slice %322 {offsets = [0, 4], sizes = [8, 4], strides = [1, 1]} : vector<8x8xf32> to vector<8x4xf32>
    %324 = vector.extract_strided_slice %322 {offsets = [0, 0], sizes = [8, 4], strides = [1, 1]} : vector<8x8xf32> to vector<8x4xf32>
    %325 = tpu.concatenate %323, %324 in 1 : vector<8x4xf32>, vector<8x4xf32> -> vector<8x8xf32>
    %c2_i32_95 = arith.constant 2 : i32
    %326 = vector.broadcast %c2_i32_95 : i32 to vector<8x1xi32>
    %327 = arith.shrsi %298, %326 : vector<8x1xi32>
    %c1_i32_96 = arith.constant 1 : i32
    %328 = vector.broadcast %c1_i32_96 : i32 to vector<8x1xi32>
    %329 = arith.andi %327, %328 : vector<8x1xi32>
    %c0_i32_97 = arith.constant 0 : i32
    %330 = vector.broadcast %c0_i32_97 : i32 to vector<8x1xi32>
    %331 = arith.cmpi ne, %329, %330 : vector<8x1xi32>
    %332 = vector.shape_cast %331 : vector<8x1xi1> to vector<8x1xi1>
    %333 = vector.broadcast %332 : vector<8x1xi1> to vector<8x8xi1>
    %334 = arith.select %333, %325, %322 : vector<8x8xi1>, vector<8x8xf32>
    %335 = arith.cmpi sge, %23, %24 : vector<8x8xi32>
    %cst_98 = arith.constant 0.000000e+00 : f32
    %336 = vector.broadcast %cst_98 : f32 to vector<8x8xf32>
    %337 = arith.select %335, %334, %336 : vector<8x8xi1>, vector<8x8xf32>
    %338 = arith.addf %278, %337 : vector<8x8xf32>
    %339 = arith.cmpi sge, %23, %24 : vector<8x8xi32>
    %cst_99 = arith.constant -1.000000e+30 : f32
    %340 = vector.broadcast %cst_99 : f32 to vector<8x8xf32>
    %341 = arith.select %339, %338, %340 : vector<8x8xi1>, vector<8x8xf32>
    %cst_100 = arith.constant dense<0xFF800000> : vector<8xf32>
    %342 = vector.multi_reduction <maximumf>, %341, %cst_100 [1] : vector<8x8xf32> to vector<8xf32>
    %343 = vector.shape_cast %342 : vector<8xf32> to vector<8x1xf32>
    %344 = vector.broadcast %343 : vector<8x1xf32> to vector<8x8xf32>
    %345 = arith.subf %341, %344 : vector<8x8xf32>
    %346 = math.exp %345 : vector<8x8xf32>
    %cst_101 = arith.constant dense<0.000000e+00> : vector<8xf32>
    %347 = vector.multi_reduction <add>, %346, %cst_101 [1] : vector<8x8xf32> to vector<8xf32>
    %348 = vector.shape_cast %347 : vector<8xf32> to vector<8x1xf32>
    %349 = arith.truncf %346 : vector<8x8xf32> to vector<8x8xbf16>
    %cst_102 = arith.constant dense<0.000000e+00> : vector<8x8xf32>
    %350 = tpu.matmul %349, %277, %cst_102 {dimension_numbers = #tpu.dot_dimension_numbers<[1], [0], [0], [1], [0, 0, 1, 1], [], []>} : vector<8x8xbf16>, vector<8x8xbf16>, vector<8x8xf32> -> vector<8x8xf32>
    %351 = tpu.reciprocal %348 {approx = true} : vector<8x1xf32> -> vector<8x1xf32>
    %352 = vector.broadcast %351 : vector<8x1xf32> to vector<8x8xf32>
    %353 = arith.mulf %350, %352 : vector<8x8xf32>
    %354 = tpu.concatenate %107, %189, %271, %353 in 1 : vector<8x8xf32>, vector<8x8xf32>, vector<8x8xf32>, vector<8x8xf32> -> vector<8x32xf32>
    %355 = arith.truncf %354 : vector<8x32xf32> to vector<8x32xbf16>
    %c0_103 = arith.constant 0 : index
    %c0_104 = arith.constant 0 : index
    %356 = vector.load %arg7[%c0_103, %c0_104] : memref<32x32xbf16, #tpu.memory_space<vmem>>, vector<32x32xbf16>
    %cst_105 = arith.constant dense<0.000000e+00> : vector<8x32xf32>
    %357 = tpu.matmul %355, %356, %cst_105 {dimension_numbers = #tpu.dot_dimension_numbers<[1], [0], [0], [1], [0, 0, 1, 1], [], []>} : vector<8x32xbf16>, vector<32x32xbf16>, vector<8x32xf32> -> vector<8x32xf32>
    %c0_106 = arith.constant 0 : index
    %c0_107 = arith.constant 0 : index
    %358 = vector.load %arg8[%c0_106, %c0_107] : memref<1x32xf32, #tpu.memory_space<vmem>>, vector<1x32xf32>
    %359 = vector.broadcast %358 : vector<1x32xf32> to vector<8x32xf32>
    %360 = arith.addf %357, %359 : vector<8x32xf32>
    %361 = arith.addf %4, %360 : vector<8x32xf32>
    %cst_108 = arith.constant dense<0.000000e+00> : vector<8xf32>
    %362 = vector.multi_reduction <add>, %361, %cst_108 [1] : vector<8x32xf32> to vector<8xf32>
    %363 = vector.shape_cast %362 : vector<8xf32> to vector<8x1xf32>
    %cst_109 = arith.constant 3.200000e+01 : f32
    %364 = vector.broadcast %cst_109 : f32 to vector<8x1xf32>
    %365 = arith.divf %363, %364 : vector<8x1xf32>
    %366 = vector.broadcast %365 : vector<8x1xf32> to vector<8x32xf32>
    %367 = arith.subf %361, %366 : vector<8x32xf32>
    %368 = arith.mulf %367, %367 : vector<8x32xf32>
    %cst_110 = arith.constant dense<0.000000e+00> : vector<8xf32>
    %369 = vector.multi_reduction <add>, %368, %cst_110 [1] : vector<8x32xf32> to vector<8xf32>
    %370 = vector.shape_cast %369 : vector<8xf32> to vector<8x1xf32>
    %cst_111 = arith.constant 3.200000e+01 : f32
    %371 = vector.broadcast %cst_111 : f32 to vector<8x1xf32>
    %372 = arith.divf %370, %371 : vector<8x1xf32>
    %373 = vector.broadcast %365 : vector<8x1xf32> to vector<8x32xf32>
    %374 = arith.subf %361, %373 : vector<8x32xf32>
    %cst_112 = arith.constant 9.99999974E-6 : f32
    %375 = vector.broadcast %cst_112 : f32 to vector<8x1xf32>
    %376 = arith.addf %372, %375 : vector<8x1xf32>
    %377 = math.rsqrt %376 : vector<8x1xf32>
    %378 = vector.broadcast %377 : vector<8x1xf32> to vector<8x32xf32>
    %379 = arith.mulf %374, %378 : vector<8x32xf32>
    %c0_113 = arith.constant 0 : index
    %c0_114 = arith.constant 0 : index
    %380 = vector.load %arg9[%c0_113, %c0_114] : memref<1x32xf32, #tpu.memory_space<vmem>>, vector<1x32xf32>
    %381 = vector.broadcast %380 : vector<1x32xf32> to vector<8x32xf32>
    %382 = arith.mulf %379, %381 : vector<8x32xf32>
    %c0_115 = arith.constant 0 : index
    %c0_116 = arith.constant 0 : index
    %383 = vector.load %arg10[%c0_115, %c0_116] : memref<1x32xf32, #tpu.memory_space<vmem>>, vector<1x32xf32>
    %384 = vector.broadcast %383 : vector<1x32xf32> to vector<8x32xf32>
    %385 = arith.addf %382, %384 : vector<8x32xf32>
    %386 = arith.truncf %385 : vector<8x32xf32> to vector<8x32xbf16>
    %c0_117 = arith.constant 0 : index
    %c0_118 = arith.constant 0 : index
    %c0_119 = arith.constant 0 : index
    %387 = vector.load %arg11[%c0_117, %c0_118, %c0_119] : memref<1x8x32xbf16, #tpu.memory_space<vmem>>, vector<1x8x32xbf16>
    %388 = vector.shape_cast %387 : vector<1x8x32xbf16> to vector<8x32xbf16>
    %389 = vector.shape_cast %386 : vector<8x32xbf16> to vector<1x8x32xbf16>
    tpu.vector_store %arg11[%c0_117, %c0_118, %c0_119], %389 {strides = array<i32>} : memref<1x8x32xbf16, #tpu.memory_space<vmem>>, vector<1x8x32xbf16>,
    return
  }
  func.func @transform_0(%arg0: i32, %arg1: i32) -> (i32, i32, i32) {
    %c0_i32 = arith.constant 0 : i32
    %c0_i32_0 = arith.constant 0 : i32
    return %arg0, %arg1, %c0_i32 : i32, i32, i32
  }
  func.func @transform_1(%arg0: i32, %arg1: i32) -> (i32, i32, i32) {
    %c0_i32 = arith.constant 0 : i32
    %c0_i32_0 = arith.constant 0 : i32
    %c0_i32_1 = arith.constant 0 : i32
    return %arg0, %c0_i32, %c0_i32_0 : i32, i32, i32
  }
  func.func @transform_2(%arg0: i32, %arg1: i32) -> (i32, i32) {
    %c0_i32 = arith.constant 0 : i32
    %c0_i32_0 = arith.constant 0 : i32
    %c0_i32_1 = arith.constant 0 : i32
    return %c0_i32, %c0_i32_0 : i32, i32
  }
  func.func @transform_3(%arg0: i32, %arg1: i32) -> (i32, i32) {
    %c0_i32 = arith.constant 0 : i32
    %c0_i32_0 = arith.constant 0 : i32
    %c0_i32_1 = arith.constant 0 : i32
    return %c0_i32, %c0_i32_0 : i32, i32
  }
  func.func @transform_4(%arg0: i32, %arg1: i32) -> (i32, i32) {
    %c0_i32 = arith.constant 0 : i32
    %c0_i32_0 = arith.constant 0 : i32
    %c0_i32_1 = arith.constant 0 : i32
    return %c0_i32, %c0_i32_0 : i32, i32
  }
  func.func @transform_5(%arg0: i32, %arg1: i32) -> (i32, i32) {
    %c0_i32 = arith.constant 0 : i32
    %c0_i32_0 = arith.constant 0 : i32
    %c0_i32_1 = arith.constant 0 : i32
    return %c0_i32, %c0_i32_0 : i32, i32
  }
  func.func @transform_6(%arg0: i32, %arg1: i32) -> (i32, i32) {
    %c0_i32 = arith.constant 0 : i32
    %c0_i32_0 = arith.constant 0 : i32
    %c0_i32_1 = arith.constant 0 : i32
    return %c0_i32, %c0_i32_0 : i32, i32
  }
  func.func @transform_7(%arg0: i32, %arg1: i32) -> (i32, i32) {
    %c0_i32 = arith.constant 0 : i32
    %c0_i32_0 = arith.constant 0 : i32
    %c0_i32_1 = arith.constant 0 : i32
    return %c0_i32, %c0_i32_0 : i32, i32
  }
  func.func @transform_8(%arg0: i32, %arg1: i32) -> (i32, i32) {
    %c0_i32 = arith.constant 0 : i32
    %c0_i32_0 = arith.constant 0 : i32
    %c0_i32_1 = arith.constant 0 : i32
    return %c0_i32, %c0_i32_0 : i32, i32
  }
  func.func @transform_9(%arg0: i32, %arg1: i32) -> (i32, i32, i32) {
    %c0_i32 = arith.constant 0 : i32
    %c0_i32_0 = arith.constant 0 : i32
    return %arg0, %arg1, %c0_i32 : i32, i32, i32
  }
}

</mosaic_0001>

<bundles_post_ra>
// kernel: transformer_decoder_rpr.8
= control target key start
LH: loop header
LB: loop body
LE: loop exit
PB: predicated region body
PF: predicated region fallthrough
CT: control target
= control target key end

     0   :  { %s717_s24 = smov 0   ;;  %s719_s25 = smov 0   ;;  %s790_s0 = inlined_call_operand.vmem [shape: bf16[2,8,32], index: 0, kind: input, shape index: {}]   ;;  %s791_s1 = inlined_call_operand.vmem [shape: bf16[32,64], index: 1, kind: input, shape index: {}]   ;;  %s792_s2 = inlined_call_operand.vmem [shape: f32[1,64], index: 2, kind: input, shape index: {}]   ;;  %s793_s3 = inlined_call_operand.vmem [shape: bf16[64,32], index: 3, kind: input, shape index: {}]   ;;  %s794_s4 = inlined_call_operand.vmem [shape: f32[1,32], index: 4, kind: input, shape index: {}]   ;;  %s795_s5 = inlined_call_operand.vmem [shape: f32[1,32], index: 5, kind: input, shape index: {}]   ;;  %s796_s6 = inlined_call_operand.vmem [shape: f32[1,32], index: 6, kind: input, shape index: {}]   ;;  %s797_s7 = inlined_call_operand.vmem [shape: bf16[2,8,32], index: 7, kind: output, shape index: {}]  }
   0x1   :  { %s721_s26 = smov 0  }
   0x2 LB: > { %s29_s27 = sadd.s32 1, %s669_s25  ;;  %p572_p0 = scmp.ge.s32.totalorder %s673_s26, 1  ;;  %s673_s26 = sphi %s721_s26, %s17_s26   ;;  %s669_s25 = sphi %s719_s25, %s799_s25   ;;  %s665_s24 = sphi %s717_s24, %s798_s24  }
   0x3   : > { %p31_p1 = scmp.ge.s32.totalorder %s29_s27, 2  ;;  %p255_p2 = scmp.lt.s32.totalorder %s673_s26, 3 }
   0x5   : > { %s801_s27 = smov (%p31_p1, %s29_s27), 0  ;;  %p256_p3 = pnand %p572_p0, %p255_p2 }
   0x6   : > { %p291_p4 = scmp.lt.s32.totalorder (!%p256_p3), %s665_s24, 1 }
   0x7   : > { %259 = sbr.rel (%p256_p3) target bundleno = 728 (0x2d8), region = 48 }
   0xc   : > { %v643_v0 = vld [vmem:[%s791_s1 + $0x8] sm:$0xff]   ;;  %v675_v1 = vmov 0.0   ;;  %v644_v2 = vld [vmem:[%s791_s1] sm:$0xff]   ;;  %vm676_vm0 = vmmov 0   ;;  %v645_v3 = vld [vmem:[%s793_s3 + $0x18] sm:$0xff]   ;;  %s803_s24 = smov (!%p291_p4, %s665_s24), 1 }
   0xd   : > { %597 = vmatprep.subr.bf16.mxu0 %v675_v1  ;;  %605 = vmatprep.subr.bf16.mxu1 %v675_v1  ;;  %v646_v4 = vld [vmem:[%s793_s3 + $0x10] sm:$0xff]   ;;  %s573_s13 = sshll.u32 %s803_s24, 2  ;;  %vm331_vm1 = vcmask 261120   ;;  %v647_v6 = vld [vmem:[%s793_s3 + $0x8] sm:$0xff]   ;;  %v648_v7 = vld [vmem:[%s793_s3] sm:$0xff]   ;;  %vm416_vm2 = vcmask 523264  }
   0xe   : > { %598 = vmatpush3.bf16.msra.mxu0 %v643_v0  ;;  %601 = vmatprep.mubr.msk.bf16.mxu0 %vm676_vm0, %v675_v1  ;;  %s297_s16 = scalar_lea.vmem %s790_s0, %s573_s13  ;;  %v575_v8 = vld [vmem:[%s792_s2] ss:$0 sm:$0xff]  ;;  %s304_s12 = scalar_lea.vmem %s797_s7, %s573_s13  ;;  %vm492_vm3 = vcmask 257024  }
   0xf   : > { %599 = vmatprep.subr.bf16.mxu0 %v675_v1  ;;  %613 = vmatprep.mubr.msk.bf16.mxu1 %vm676_vm0, %v675_v1  ;;  %v306_v5 = vld [vmem:[%s297_s16] sm:$0xf] }
  0x10   : > { %606 = vmatpush3.bf16.msra.mxu1 %v645_v3  ;;  %v579_v16 = vld [vmem:[%s794_s4] ss:$0 sm:$0xff]  ;;  %v307_v17 = vunpack.c.l.bf16 %v306_v5 }
  0x11   : > { %607 = vmatprep.subr.bf16.mxu1 %v675_v1  ;;  %v585_v34 = vld [vmem:[%s795_s5] ss:$0 sm:$0xff] }
  0x12   : > { %600 = vmatpush3.bf16.msra.mxu0 %v644_v2  ;;  %v586_v36 = vld [vmem:[%s796_s6] ss:$0 sm:$0xff] }
  0x14   : > { %608 = vmatpush3.bf16.msra.mxu1 %v646_v4 }
  0x15   : > { %602 = vmatmul.mubr.msk.bf16.vlgmr.msra.gmra.mxu0 %vm331_vm1, %v306_v5  ;;  %609 = vmatprep.subr.bf16.mxu1 %v675_v1 }
  0x18   : > { %610 = vmatpush3.bf16.msra.mxu1 %v647_v6 }
  0x19   : > { %611 = vmatprep.subr.bf16.mxu1 %v675_v1 }
  0x1c   : > { %612 = vmatpush3.bf16.msra.mxu1 %v648_v7 }
  0xd5   : > { %v369_v9 = vpop.f32.mrf.mxu0 }
  0xd6   : > { %v370_v10 = vadd.f32 %v575_v8, %v369_v9 }
  0xd7   : > { %v603_v11 = vpop.f32.mrf.mxu0 }
  0xd8   : > { %v375_v12 = vmax.f32 %v370_v10, 0.0 }
  0xd9   : > { %v372_v13 = vpop.f32.mrf.mxu0 }
  0xda   : > { %v376_v14 = vpack.c.bf16 %v375_v12, %v375_v12 }
  0xdb   : > { %v604_v15 = vpop.f32.mrf.mxu0 }
  0xdc   : > { %614 = vmatmul.mubr.msk.bf16.vlgmr.msra.gmra.mxu1 %vm416_vm2, %v376_v14 }
 0x19c   : > { %v454_v18 = vpop.f32.mrf.mxu1 }
 0x19d   : > { %v455_v19 = vadd.f32 %v579_v16, %v454_v18 }
 0x19e   : > { %v615_v20 = vpop.f32.mrf.mxu1 }
 0x19f   : > { %v460_v21 = vadd.f32 %v455_v19, %v307_v17 }
 0x1a0   : > { %v457_v22 = vpop.f32.mrf.mxu1 }
 0x1a1   : > { %v461_v23 = vsel %vm331_vm1, %v460_v21, 0.0 }
 0x1a2   : > { %v616_v24 = vpop.f32.mrf.mxu1  ;;  %462 = vadd.xlane.f32.xlu0 %v461_v23 }
 0x22b   : > { %v463_v25 = vpop.xlane.xlu0 %462 }
 0x22c   : > { %v465_v26 = vmul.f32 0.03125, %v463_v25 }
 0x22e   : > { %v466_v27 = vsub.f32 %v460_v21, %v465_v26 }
 0x230   : > { %v467_v28 = vmul.f32 %v466_v27, %v466_v27 }
 0x232   : > { %v468_v29 = vsel %vm331_vm1, %v467_v28, 0.0 }
 0x233   : > { %469 = vadd.xlane.f32.xlu0 %v468_v29 }
 0x2bc   : > { %v470_v30 = vpop.xlane.xlu0 %469 }
 0x2bd   : > { %v471_v31 = vmul.f32 0.03125, %v470_v30 }
 0x2bf   : > { %v472_v32 = vadd.f32 1e-05, %v471_v31 }
 0x2c1   : > { %649 = vrsqrt.f32 %v472_v32 }
 0x2ce   : > { %v650_v33 = vpop.eup %649 }
 0x2cf   : > { %v474_v35 = vmul.f32 %v650_v33, %v466_v27 }
 0x2d1   : > { %v482_v37 = vmul.f32 %v585_v34, %v474_v35 }
 0x2d3   : > { %v490_v38 = vadd.f32 %v586_v36, %v482_v37 }
 0x2d5   : > { %v491_v39 = vpack.c.bf16 %v490_v38, %v490_v38 }
 0x2d7   : > { %493 = vst.msk [vmem:[%s304_s12] sm:$0xf] %vm492_vm3, %v491_v39 }
 0x2d8 PF: > { %s17_s26 = sadd.s32 1, %s673_s26   ;;  %s798_s24 = smov %s669_s25 }
 0x2d9   : > { %p14_p5 = scmp.ge.s32.totalorder %s17_s26, 4   ;;  %s799_s25 = smov %s801_s27 }
 0x2db   :  { %16 = sbr.rel (!%p14_p5) target bundleno = 2 (0x2), region = 78 }

// kernel: transformer_decoder_rpr.7
= control target key start
LH: loop header
LB: loop body
LE: loop exit
PB: predicated region body
PF: predicated region fallthrough
CT: control target
= control target key end

     0   :  { %s1389_s27 = smov 0   ;;  %s1391_s28 = smov 0   ;;  %s1528_s0 = inlined_call_operand.vmem [shape: bf16[2,8,32], index: 0, kind: input, shape index: {}]   ;;  %s1529_s1 = inlined_call_operand.vmem [shape: bf16[2,16,32], index: 1, kind: input, shape index: {}]   ;;  %s1530_s2 = inlined_call_operand.vmem [shape: bf16[32,96], index: 2, kind: input, shape index: {}]   ;;  %s1531_s3 = inlined_call_operand.vmem [shape: f32[1,96], index: 3, kind: input, shape index: {}]   ;;  %s1532_s4 = inlined_call_operand.vmem [shape: bf16[32,32], index: 4, kind: input, shape index: {}]   ;;  %s1533_s5 = inlined_call_operand.vmem [shape: f32[1,32], index: 5, kind: input, shape index: {}]   ;;  %s1534_s6 = inlined_call_operand.vmem [shape: f32[1,32], index: 6, kind: input, shape index: {}]   ;;  %s1535_s7 = inlined_call_operand.vmem [shape: f32[1,32], index: 7, kind: input, shape index: {}]   ;;  %s1536_s8 = inlined_call_operand.vmem [shape: bf16[2,8,32], index: 8, kind: output, shape index: {}]  }
   0x1   :  { %s1393_s29 = smov 0  }
   0x2 LB: > { %s30_s30 = sadd.s32 1, %s1326_s28  ;;  %p1124_p0 = scmp.ge.s32.totalorder %s1330_s29, 1  ;;  %s1330_s29 = sphi %s1393_s29, %s18_s29   ;;  %s1326_s28 = sphi %s1391_s28, %s1538_s28   ;;  %s1322_s27 = sphi %s1389_s27, %s1537_s27  }
   0x3   : > { %p32_p1 = scmp.ge.s32.totalorder %s30_s30, 2  ;;  %p290_p2 = scmp.lt.s32.totalorder %s1330_s29, 3 }
   0x5   : > { %s1540_s30 = smov (%p32_p1, %s30_s30), 0  ;;  %p291_p3 = pnand %p1124_p0, %p290_p2 }
   0x6   : > { %s1332_s11 = smov (!%p291_p3), 96   ;;  %p333_p4 = scmp.lt.s32.totalorder (!%p291_p3), %s1322_s27, 1 }
   0x7   : > { %294 = sbr.rel (%p291_p3) target bundleno = 1651 (0x673), region = 52  ;;  %s1335_s24 = smov (!%p291_p3), 120  }
   0x8   : > { %s1336_s25 = smov (!%p291_p3), 112   ;;  %s1337_s26 = smov (!%p291_p3), 104  }
   0x9   : > { %s1338_s9 = smov (!%p291_p3), 88   ;;  %s1339_s10 = smov (!%p291_p3), 80  }
   0xa   : > { %s1340_s12 = smov (!%p291_p3), 72   ;;  %s1341_s14 = smov (!%p291_p3), 8  }
   0xb   : > { %s1342_s18 = smov (!%p291_p3), 16   ;;  %s1343_s19 = smov (!%p291_p3), 24  }
   0xc   : > { %v1285_v0 = vld [vmem:[%s1530_s2 + $0x8] sm:$0xff]   ;;  %v1286_v1 = vld [vmem:[%s1530_s2] sm:$0xff]   ;;  %v1333_v2 = vmov 0.0   ;;  %vm1334_vm0 = vmmov 0   ;;  %s1542_s27 = smov (!%p333_p4, %s1322_s27), 1  ;;  %vm380_vm1 = vcmask 261120  }
   0xd   : > { %431 = vrot.lane.b32.xlu0 %v1285_v0, %s1332_s11  ;;  %1185 = vmatprep.subr.bf16.mxu1 %v1333_v2  ;;  %v1129_v3 = vld [vmem:[%s1531_s3] ss:$0 sm:$0xff]  ;;  %s1151_s16 = sshll.u32 %s1542_s27, 3  ;;  %s1125_s17 = sshll.u32 %s1542_s27, 2  ;;  %vm485_vm2 = vcmask 64512   ;;  %vm532_vm3 = vcmask 130048  }
   0xe   : > { %1177 = vmatprep.subr.bf16.mxu0 %v1333_v2  ;;  %1189 = vmatprep.mubr.msk.bf16.mxu1 %vm1334_vm0, %v1333_v2  ;;  %s344_s20 = scalar_lea.vmem %s1529_s1, %s1151_s16  ;;  %s339_s23 = scalar_lea.vmem %s1528_s0, %s1125_s17  ;;  %vm931_vm4 = vcmask 195584   ;;  %vm1032_vm5 = vcmask 257024  }
   0xf   : > { %1178 = vmatpush3.bf16.msra.mxu0 %v1285_v0  ;;  %1181 = vmatprep.mubr.msk.bf16.mxu0 %vm1334_vm0, %v1333_v2  ;;  %v1438_v4 = vld [vmem:[%s339_s23] sm:$0xf] }
  0x10   : > { %1179 = vmatprep.subr.bf16.mxu0 %v1333_v2  ;;  %435 = vrot.lane.b32.xlu1 %v1129_v3, %s1332_s11  ;;  %v1287_v7 = vld [vmem:[%s344_s20] sm:$0xff]  }
  0x11   : > { %429 = vrot.lane.b32.xlu0 %v1286_v1, %s1332_s11 }
  0x13   : > { %1180 = vmatpush3.bf16.msra.mxu0 %v1286_v1 }
  0x14   : > { %1193 = vmatprep.subr.bf16.mxu0 %v1333_v2 }
  0x16   : > { %1182 = vmatmul.mubr.msk.bf16.vlgmr.msra.gmra.mxu0 %vm380_vm1, %v1438_v4 }
  0x17   : > { %1195 = vmatprep.mubr.msk.bf16.mxu0 %vm1334_vm0, %v1333_v2 }
  0x7f   : > { %v432_v5 = vpop.permute.xlu0 %431 }
  0x80   : > { %1186 = vmatpush3.bf16.msra.mxu1 %v432_v5 }
  0x81   : > { %1187 = vmatprep.subr.bf16.mxu1 %v1333_v2 }
  0x82   : > { %v436_v16 = vpop.permute.xlu1 %435 }
  0x83   : > { %v430_v6 = vpop.permute.xlu0 %429 }
  0x84   : > { %1188 = vmatpush3.bf16.msra.mxu1 %v430_v6 }
  0x85   : > { %1199 = vmatprep.subr.bf16.mxu1 %v1333_v2 }
  0x87   : > { %1190 = vmatmul.mubr.msk.bf16.vlgmr.msra.gmra.mxu1 %vm380_vm1, %v1287_v7 }
  0x88   : > { %1201 = vmatprep.mubr.msk.bf16.mxu1 %vm1334_vm0, %v1333_v2 }
  0xd6   : > { %v418_v8 = vpop.f32.mrf.mxu0 }
  0xd7   : > { %v419_v9 = vadd.f32 %v1129_v3, %v418_v8 }
  0xd8   : > { %v1183_v10 = vpop.f32.mrf.mxu0 }
  0xd9   : > { %v482_v11 = vmul.f32 0.35355338, %v419_v9 }
  0xda   : > { %v421_v12 = vpop.f32.mrf.mxu0 }
  0xdb   : > { %v483_v13 = vpack.c.bf16 %v482_v11, %v482_v11 }
  0xdc   : > { %v1184_v14 = vpop.f32.mrf.mxu0 }
  0xdd   : > { %593 = vrot.lane.b32.xlu0 %v483_v13, %s1335_s24 }
  0xe1   : > { %701 = vrot.lane.b32.xlu0 %v483_v13, %s1336_s25 }
  0xe5   : > { %809 = vrot.lane.b32.xlu0 %v483_v13, %s1337_s26 }
 0x147   : > { %v475_v15 = vpop.f32.mrf.mxu1 }
 0x148   : > { %v476_v19 = vadd.f32 %v475_v15, %v436_v16 }
 0x149   : > { %v1191_v17 = vpop.f32.mrf.mxu1 }
 0x14b   : > { %v478_v18 = vpop.f32.mrf.mxu1 }
 0x14c   : > { %v479_v20 = vadd.f32 %v478_v18, %v436_v16 }
 0x14d   : > { %v1192_v21 = vpop.f32.mrf.mxu1 }
 0x14e   : > { %v484_v22 = vpack.c.bf16 %v479_v20, %v476_v19 }
 0x14f   : > { %v594_v27 = vpop.permute.xlu0 %593 }
 0x150   : > { %595 = vrot.lane.b32.xlu1 %v484_v22, %s1335_s24  ;;  %v490_v23 = vsel %vm485_vm2, %v484_v22, 0 }
 0x151   : > { %1194 = vmatpush3.bf16.xpose.msra.mxu0 %v490_v23 }
 0x152   : > { %1205 = vmatprep.subr.bf16.mxu0 %v1333_v2 }
 0x153   : > { %v702_v30 = vpop.permute.xlu0 %701 }
 0x154   : > { %703 = vrot.lane.b32.xlu1 %v484_v22, %s1336_s25 }
 0x157   : > { %v810_v32 = vpop.permute.xlu0 %809 }
 0x158   : > { %811 = vrot.lane.b32.xlu1 %v484_v22, %s1337_s26  ;;  %1196 = vmatmul.mubr.msk.bf16.vlgmr.msra.gmra.mxu0 %vm485_vm2, %v483_v13 }
 0x159   : > { %1207 = vmatprep.mubr.msk.bf16.mxu0 %vm1334_vm0, %v1333_v2 }
 0x1c2   : > { %v596_v24 = vpop.permute.xlu1 %595 }
 0x1c3   : > { %v601_v25 = vsel %vm485_vm2, %v596_v24, 0 }
 0x1c4   : > { %1206 = vmatpush3.bf16.xpose.msra.mxu0 %v601_v25  ;;  %v1288_v25 = vld [vmem:[%s1532_s4 + $0x8] sm:$0xff]  }
 0x1c5   : > { %1217 = vmatprep.subr.bf16.mxu0 %v1333_v2 }
 0x1c6   : > { %v704_v26 = vpop.permute.xlu1 %703 }
 0x1c7   : > { %v709_v28 = vsel %vm485_vm2, %v704_v26, 0 }
 0x1ca   : > { %v812_v29 = vpop.permute.xlu1 %811 }
 0x1cb   : > { %1208 = vmatmul.mubr.msk.bf16.vlgmr.msra.gmra.mxu0 %vm485_vm2, %v594_v27  ;;  %v817_v31 = vsel %vm485_vm2, %v812_v29, 0 }
 0x1cc   : > { %1218 = vmatpush3.bf16.xpose.msra.mxu0 %v709_v28  ;;  %1219 = vmatprep.mubr.msk.bf16.mxu0 %vm1334_vm0, %v1333_v2 }
 0x1cd   : > { %1229 = vmatprep.subr.bf16.mxu0 %v1333_v2 }
 0x1d3   : > { %1220 = vmatmul.mubr.msk.bf16.vlgmr.msra.gmra.mxu0 %vm485_vm2, %v702_v30 }
 0x1d4   : > { %1230 = vmatpush3.bf16.xpose.msra.mxu0 %v817_v31  ;;  %1231 = vmatprep.mubr.msk.bf16.mxu0 %vm1334_vm0, %v1333_v2 }
 0x1d5   : > { %1241 = vmatprep.subr.bf16.mxu0 %v1333_v2 }
 0x1db   : > { %1232 = vmatmul.mubr.msk.bf16.vlgmr.msra.gmra.mxu0 %vm485_vm2, %v810_v32  ;;  %v1289_v32 = vld [vmem:[%s1532_s4] sm:$0xff]  }
 0x1dc   : > { %1245 = vmatprep.mubr.msk.bf16.mxu0 %vm1334_vm0, %v1333_v2  ;;  %1242 = vmatpush3.bf16.msra.mxu0 %v1288_v25 }
 0x1dd   : > { %1243 = vmatprep.subr.bf16.mxu0 %v1333_v2 }
 0x1e0   : > { %1244 = vmatpush3.bf16.msra.mxu0 %v1289_v32 }
 0x218   : > { %v526_v33 = vpop.f32.mrf.mxu0 }
 0x219   : > { %v533_v34 = vsel %vm532_vm3, %v526_v33, -inf }
 0x21a   : > { %534 = vmax.xlane.f32.xlu1 %v533_v34  ;;  %v1197_v35 = vpop.f32.mrf.mxu0 }
 0x21c   : > { %v529_v36 = vpop.f32.mrf.mxu0 }
 0x21e   : > { %v1198_v37 = vpop.f32.mrf.mxu0 }
 0x22b   : > { %653 = vrot.lane.b32.xlu1 %v484_v22, %s1338_s9 }
 0x28b   : > { %v637_v38 = vpop.f32.mrf.mxu0 }
 0x28c   : > { %v643_v39 = vsel %vm532_vm3, %v637_v38, -inf }
 0x28d   : > { %644 = vmax.xlane.f32.xlu0 %v643_v39  ;;  %v1209_v40 = vpop.f32.mrf.mxu0 }
 0x28f   : > { %v640_v41 = vpop.f32.mrf.mxu0 }
 0x291   : > { %v1210_v42 = vpop.f32.mrf.mxu0 }
 0x293   : > { %v745_v43 = vpop.f32.mrf.mxu0 }
 0x294   : > { %v751_v44 = vsel %vm532_vm3, %v745_v43, -inf }
 0x295   : > { %752 = vmax.xlane.f32.xlu0 %v751_v44  ;;  %v1221_v45 = vpop.f32.mrf.mxu0 }
 0x297   : > { %v748_v46 = vpop.f32.mrf.mxu0 }
 0x299   : > { %v1222_v47 = vpop.f32.mrf.mxu0 }
 0x29b   : > { %v853_v48 = vpop.f32.mrf.mxu0 }
 0x29c   : > { %v859_v49 = vsel %vm532_vm3, %v853_v48, -inf }
 0x29d   : > { %860 = vmax.xlane.f32.xlu1 %v859_v49  ;;  %v1233_v50 = vpop.f32.mrf.mxu0 }
 0x29f   : > { %v856_v51 = vpop.f32.mrf.mxu0 }
 0x2a1   : > { %v1234_v52 = vpop.f32.mrf.mxu0 }
 0x2a3   : > { %v535_v53 = vpop.xlane.xlu1 %534 }
 0x2a4   : > { %v536_v54 = vsub.f32 %v526_v33, %v535_v53 }
 0x2a6   : > { %v537_v55 = vmul.f32 1.442695, %v536_v54 }
 0x2a7   : > { %v654_v63 = vpop.permute.xlu1 %653 }
 0x2a8   : > { %1290 = vpow2.f32 %v537_v55  ;;  %v1143_v55 = vld [vmem:[%s1533_s5] ss:$0 sm:$0xff] }
 0x2ab   : > { %544 = vrot.lane.b32.xlu0 %v484_v22, %s1332_s11 }
 0x2ae   : > { %761 = vrot.lane.b32.xlu1 %v484_v22, %s1339_s10  ;;  %s351_s10 = scalar_lea.vmem %s1536_s8, %s1125_s17 }
 0x2af   : > { %869 = vrot.lane.b32.xlu0 %v484_v22, %s1340_s12 }
 0x2b5   : > { %v1291_v61 = vpop.eup %1290 }
 0x2b6   : > { %v542_v1 = vpack.c.bf16 %v1291_v61, %v1291_v61  ;;  %v539_v10 = vsel %vm532_vm3, %v1291_v61, 0.0 }
 0x316   : > { %v645_v56 = vpop.xlane.xlu0 %644 }
 0x317   : > { %v646_v57 = vsub.f32 %v637_v38, %v645_v56  ;;  %v356_v56 = vunpack.c.l.bf16 %v1438_v4 }
 0x319   : > { %v647_v58 = vmul.f32 1.442695, %v646_v57 }
 0x31b   : > { %1292 = vpow2.f32 %v647_v58 }
 0x31e   : > { %v753_v59 = vpop.xlane.xlu0 %752 }
 0x31f   : > { %v754_v60 = vsub.f32 %v745_v43, %v753_v59 }
 0x321   : > { %v755_v62 = vmul.f32 1.442695, %v754_v60 }
 0x322   : > { %v545_v0 = vpop.permute.xlu0 %544 }
 0x323   : > { %1294 = vpow2.f32 %v755_v62  ;;  %1200 = vmatpush3.bf16.msra.mxu1 %v545_v0 }
 0x324   : > { %1211 = vmatprep.subr.bf16.mxu1 %v1333_v2 }
 0x326   : > { %1202 = vmatmul.mubr.msk.bf16.vlgmr.msra.gmra.mxu1 %vm532_vm3, %v542_v1  ;;  %v861_v3 = vpop.xlane.xlu1 %860  ;;  %v870_v15 = vpop.permute.xlu0 %869 }
 0x327   : > { %v862_v5 = vsub.f32 %v853_v48, %v861_v3  ;;  %1212 = vmatpush3.bf16.msra.mxu1 %v654_v63  ;;  %1213 = vmatprep.mubr.msk.bf16.mxu1 %vm1334_vm0, %v1333_v2 }
 0x328   : > { %v1293_v6 = vpop.eup %1292  ;;  %1223 = vmatprep.subr.bf16.mxu1 %v1333_v2 }
 0x329   : > { %v863_v7 = vmul.f32 1.442695, %v862_v5  ;;  %v649_v8 = vsel %vm532_vm3, %v1293_v6, 0.0  ;;  %v652_v9 = vpack.c.bf16 %v1293_v6, %v1293_v6 }
 0x32a   : > { %650 = vadd.xlane.f32.xlu1 %v649_v8  ;;  %v762_v11 = vpop.permute.xlu1 %761 }
 0x32b   : > { %1296 = vpow2.f32 %v863_v7 }
 0x32e   : > { %1214 = vmatmul.mubr.msk.bf16.vlgmr.msra.gmra.mxu1 %vm532_vm3, %v652_v9  ;;  %540 = vadd.xlane.f32.xlu1 %v539_v10  ;;  %v1147_v10 = vld [vmem:[%s1534_s6] ss:$0 sm:$0xff] }
 0x32f   : > { %1224 = vmatpush3.bf16.msra.mxu1 %v762_v11  ;;  %1225 = vmatprep.mubr.msk.bf16.mxu1 %vm1334_vm0, %v1333_v2 }
 0x330   : > { %v1295_v12 = vpop.eup %1294  ;;  %1235 = vmatprep.subr.bf16.mxu1 %v1333_v2 }
 0x331   : > { %v757_v13 = vsel %vm532_vm3, %v1295_v12, 0.0  ;;  %v760_v14 = vpack.c.bf16 %v1295_v12, %v1295_v12  ;;  %v1148_v12 = vld [vmem:[%s1535_s7] ss:$0 sm:$0xff] }
 0x332   : > { %758 = vadd.xlane.f32.xlu0 %v757_v13 }
 0x336   : > { %1226 = vmatmul.mubr.msk.bf16.vlgmr.msra.gmra.mxu1 %vm532_vm3, %v760_v14 }
 0x337   : > { %1236 = vmatpush3.bf16.msra.mxu1 %v870_v15  ;;  %1237 = vmatprep.mubr.msk.bf16.mxu1 %vm1334_vm0, %v1333_v2 }
 0x338   : > { %v1297_v16 = vpop.eup %1296 }
 0x339   : > { %v865_v17 = vsel %vm532_vm3, %v1297_v16, 0.0  ;;  %v868_v18 = vpack.c.bf16 %v1297_v16, %v1297_v16 }
 0x33a   : > { %866 = vadd.xlane.f32.xlu0 %v865_v17 }
 0x33e   : > { %1238 = vmatmul.mubr.msk.bf16.vlgmr.msra.gmra.mxu1 %vm532_vm3, %v868_v18 }
 0x3b3   : > { %v651_v19 = vpop.xlane.xlu1 %650 }
 0x3b4   : > { %1298 = vrcp.f32 %v651_v19 }
 0x3b7   : > { %v541_v45 = vpop.xlane.xlu1 %540 }
 0x3bb   : > { %v759_v20 = vpop.xlane.xlu0 %758 }
 0x3bc   : > { %1300 = vrcp.f32 %v759_v20 }
 0x3c1   : > { %v1299_v26 = vpop.eup %1298 }
 0x3c3   : > { %v867_v27 = vpop.xlane.xlu0 %866 }
 0x3c4   : > { %1302 = vrcp.f32 %v867_v27 }
 0x3c5   : > { %1304 = vrcp.f32 %v541_v45 }
 0x3c9   : > { %v1301_v34 = vpop.eup %1300 }
 0x3d1   : > { %v1303_v2 = vpop.eup %1302 }
 0x3d2   : > { %v1305_v46 = vpop.eup %1304 }
 0x3e6   : > { %v584_v21 = vpop.f32.mrf.mxu1 }
 0x3e7   : > { %v591_v49 = vmul.f32 %v1305_v46, %v584_v21 }
 0x3e8   : > { %v1203_v22 = vpop.f32.mrf.mxu1 }
 0x3ea   : > { %v587_v23 = vpop.f32.mrf.mxu1 }
 0x3ec   : > { %v1204_v24 = vpop.f32.mrf.mxu1 }
 0x3ee   : > { %v693_v28 = vpop.f32.mrf.mxu1 }
 0x3ef   : > { %v700_v29 = vmul.f32 %v1299_v26, %v693_v28 }
 0x3f0   : > { %v1215_v30 = vpop.f32.mrf.mxu1 }
 0x3f1   : > { %918 = vrot.lane.b32.xlu0 %v700_v29, %s1341_s14 }
 0x3f2   : > { %v696_v31 = vpop.f32.mrf.mxu1 }
 0x3f4   : > { %v1216_v33 = vpop.f32.mrf.mxu1 }
 0x3f6   : > { %v801_v35 = vpop.f32.mrf.mxu1 }
 0x3f7   : > { %v808_v36 = vmul.f32 %v1301_v34, %v801_v35 }
 0x3f8   : > { %v1227_v37 = vpop.f32.mrf.mxu1 }
 0x3f9   : > { %922 = vrot.lane.b32.xlu1 %v808_v36, %s1342_s18 }
 0x3fa   : > { %v804_v38 = vpop.f32.mrf.mxu1 }
 0x3fc   : > { %v1228_v39 = vpop.f32.mrf.mxu1 }
 0x3fe   : > { %v909_v40 = vpop.f32.mrf.mxu1 }
 0x3ff   : > { %v916_v41 = vmul.f32 %v1303_v2, %v909_v40 }
 0x400   : > { %v1239_v42 = vpop.f32.mrf.mxu1 }
 0x401   : > { %926 = vrot.lane.b32.xlu1 %v916_v41, %s1343_s19 }
 0x402   : > { %v912_v43 = vpop.f32.mrf.mxu1 }
 0x404   : > { %v1240_v44 = vpop.f32.mrf.mxu1 }
 0x463   : > { %v919_v47 = vpop.permute.xlu0 %918 }
 0x464   : > { %v929_v50 = vsel %vm485_vm2, %v591_v49, %v919_v47 }
 0x46b   : > { %v923_v48 = vpop.permute.xlu1 %922 }
 0x46c   : > { %v930_v51 = vsel %vm532_vm3, %v929_v50, %v923_v48 }
 0x473   : > { %v927_v52 = vpop.permute.xlu1 %926 }
 0x474   : > { %v932_v53 = vsel %vm931_vm4, %v930_v51, %v927_v52 }
 0x475   : > { %v933_v54 = vpack.c.bf16 %v932_v53, %v932_v53 }
 0x477   : > { %1246 = vmatmul.mubr.msk.bf16.vlgmr.msra.gmra.mxu0 %vm380_vm1, %v933_v54 }
 0x537   : > { %v994_v57 = vpop.f32.mrf.mxu0 }
 0x538   : > { %v995_v58 = vadd.f32 %v1143_v55, %v994_v57 }
 0x539   : > { %v1247_v59 = vpop.f32.mrf.mxu0 }
 0x53a   : > { %v1000_v60 = vadd.f32 %v995_v58, %v356_v56 }
 0x53b   : > { %v997_v61 = vpop.f32.mrf.mxu0 }
 0x53c   : > { %v1001_v62 = vsel %vm380_vm1, %v1000_v60, 0.0 }
 0x53d   : > { %v1248_v63 = vpop.f32.mrf.mxu0  ;;  %1002 = vadd.xlane.f32.xlu0 %v1001_v62 }
 0x5c6   : > { %v1003_v0 = vpop.xlane.xlu0 %1002 }
 0x5c7   : > { %v1005_v1 = vmul.f32 0.03125, %v1003_v0 }
 0x5c9   : > { %v1006_v3 = vsub.f32 %v1000_v60, %v1005_v1 }
 0x5cb   : > { %v1007_v5 = vmul.f32 %v1006_v3, %v1006_v3 }
 0x5cd   : > { %v1008_v6 = vsel %vm380_vm1, %v1007_v5, 0.0 }
 0x5ce   : > { %1009 = vadd.xlane.f32.xlu1 %v1008_v6 }
 0x657   : > { %v1010_v7 = vpop.xlane.xlu1 %1009 }
 0x658   : > { %v1011_v8 = vmul.f32 0.03125, %v1010_v7 }
 0x65a   : > { %v1012_v4 = vadd.f32 1e-05, %v1011_v8 }
 0x65c   : > { %1306 = vrsqrt.f32 %v1012_v4 }
 0x669   : > { %v1307_v9 = vpop.eup %1306 }
 0x66a   : > { %v1014_v11 = vmul.f32 %v1307_v9, %v1006_v3 }
 0x66c   : > { %v1022_v13 = vmul.f32 %v1147_v10, %v1014_v11 }
 0x66e   : > { %v1030_v14 = vadd.f32 %v1148_v12, %v1022_v13 }
 0x670   : > { %v1031_v15 = vpack.c.bf16 %v1030_v14, %v1030_v14 }
 0x672   : > { %1033 = vst.msk [vmem:[%s351_s10] sm:$0xf] %vm1032_vm5, %v1031_v15 }
 0x673 PF: > { %s18_s29 = sadd.s32 1, %s1330_s29   ;;  %s1537_s27 = smov %s1326_s28 }
 0x674   : > { %p15_p5 = scmp.ge.s32.totalorder %s18_s29, 4   ;;  %s1538_s28 = smov %s1540_s30 }
 0x676   :  { %17 = sbr.rel (!%p15_p5) target bundleno = 2 (0x2), region = 85 }

// kernel: transformer_decoder_rpr.6
= control target key start
LH: loop header
LB: loop body
LE: loop exit
PB: predicated region body
PF: predicated region fallthrough
CT: control target
= control target key end

     0   :  { %s1782_s30 = smov 0   ;;  %s1784_s10 = smov 0   ;;  %s2086_s0 = inlined_call_operand.vmem [shape: bf16[2,8,32], index: 0, kind: input, shape index: {}, may-alias: {0,1}]   ;;  %s2087_s1 = inlined_call_operand.vmem [shape: bf16[2,8,32], index: 1, kind: input, shape index: {}, may-alias: {0,1}]   ;;  %s2088_s2 = inlined_call_operand.vmem [shape: bf16[32,96], index: 2, kind: input, shape index: {}]   ;;  %s2089_s3 = inlined_call_operand.vmem [shape: f32[1,96], index: 3, kind: input, shape index: {}]   ;;  %s2090_s4 = inlined_call_operand.vmem [shape: bf16[8,8], index: 4, kind: input, shape index: {}]   ;;  %s2091_s5 = inlined_call_operand.vmem [shape: bf16[32,32], index: 5, kind: input, shape index: {}]   ;;  %s2092_s6 = inlined_call_operand.vmem [shape: f32[1,32], index: 6, kind: input, shape index: {}]   ;;  %s2093_s7 = inlined_call_operand.vmem [shape: f32[1,32], index: 7, kind: input, shape index: {}]   ;;  %s2094_s8 = inlined_call_operand.vmem [shape: f32[1,32], index: 8, kind: input, shape index: {}]   ;;  %s2095_s9 = inlined_call_operand.vmem [shape: bf16[2,8,32], index: 9, kind: output, shape index: {}]  }
   0x1   :  { %s1786_s11 = smov 0  }
   0x2 LB: > { %s31_s12 = sadd.s32 1, %s1708_s10  ;;  %p1468_p0 = scmp.ge.s32.totalorder %s1712_s11, 1  ;;  %s1712_s11 = sphi %s1786_s11, %s19_s11   ;;  %s1708_s10 = sphi %s1784_s10, %s2101_s10   ;;  %s1704_s30 = sphi %s1782_s30, %s2100_s30  }
   0x3   : > { %p33_p1 = scmp.ge.s32.totalorder %s31_s12, 2  ;;  %p314_p2 = scmp.lt.s32.totalorder %s1712_s11, 3 }
   0x5   : > { %s2103_s12 = smov (%p33_p1, %s31_s12), 0  ;;  %p315_p3 = pnand %p1468_p0, %p314_p2 }
   0x6   : > { %s1715_s15 = smov (!%p315_p3), 96   ;;  %p358_p4 = scmp.lt.s32.totalorder (!%p315_p3), %s1704_s30, 1 }
   0x7   : > { %318 = sbr.rel (%p315_p3) target bundleno = 2846 (0xb1e), region = 56  ;;  %s1717_s29 = smov (!%p315_p3), 1  }
   0x8   : > { %s1719_s13 = smov (!%p315_p3), 120   ;;  %s1720_s14 = smov (!%p315_p3), 2  }
   0x9   : > { %s1721_s16 = smov (!%p315_p3), 122   ;;  %s1722_s17 = smov (!%p315_p3), 4  }
   0xa   : > { %s1723_s18 = smov (!%p315_p3), 124   ;;  %s1724_s19 = smov (!%p315_p3), 112  }
   0xb   : > { %s1726_s20 = smov (!%p315_p3), 104   ;;  %s1727_s21 = smov (!%p315_p3), 80  }
   0xc   : > { %v1668_v0 = vld [vmem:[%s2088_s2 + $0x8] sm:$0xff]   ;;  %v1714_v1 = vmov 0.0   ;;  %v1669_v2 = vld [vmem:[%s2088_s2] sm:$0xff]   ;;  %vm1716_vm0 = vmmov 0   ;;  %s2105_s30 = smov (!%p358_p4, %s1704_s30), 1  ;;  %vm510_vm1 = vcmask 64512   ;;  %v501_v25 = vlaneseq }
   0xd   : > { %1530 = vmatprep.subr.bf16.mxu0 %v1714_v1  ;;  %1538 = vmatprep.subr.bf16.mxu1 %v1714_v1  ;;  %v507_v3 = vld [vmem:[%s2090_s4] sm:$0xf]  ;;  %s1822_s22 = sshll.u32 %s2105_s30, 2  ;;  %vm403_vm2 = vcmask 261120   ;;  %s1718_s30 = smov 121   ;;  %vm577_vm4 = vcmask 7168  }
   0xe   : > { %449 = vrot.lane.b32.xlu0 %v1668_v0, %s1715_s15  ;;  %1531 = vmatpush3.bf16.msra.mxu0 %v1668_v0  ;;  %v1472_v4 = vld [vmem:[%s2089_s3] ss:$0 sm:$0xff]  ;;  %s364_s25 = scalar_lea.vmem %s2086_s0, %s1822_s22  ;;  %v1830_v5 = vsel %vm510_vm1, %v507_v3, 0  ;;  %s368_s28 = scalar_lea.vmem %s2087_s1, %s1822_s22  ;;  %v502_v26 = vshrl.u32 %v501_v25, 7  ;;  %v506_v27 = vand.u32 127, %v501_v25  ;;  %vm591_vm6 = vcmask 15360  }
   0xf   : > { %1532 = vmatprep.subr.bf16.mxu0 %v1714_v1  ;;  %1534 = vmatprep.mubr.msk.bf16.mxu0 %vm1716_vm0, %v1714_v1  ;;  %v1832_v6 = vld [vmem:[%s364_s25] sm:$0xf]  ;;  %vm606_vm8 = vcmask 31744   ;;  %vm676_vm10 = vcmask 1043456   ;;  %s1728_s23 = smov 72   ;;  %s1729_s24 = smov 8  }
  0x10   : > { %1542 = vmatprep.mubr.msk.bf16.mxu1 %vm1716_vm0, %v1714_v1  ;;  %453 = vrot.lane.b32.xlu1 %v1472_v4, %s1715_s15  ;;  %v378_v9 = vld [vmem:[%s368_s28] sm:$0xf]  ;;  %vm1866_vm3 = vcmp.ge.s32.totalorder %v502_v26, %v506_v27  ;;  %v557_v33 = vadd.s32 1, %v502_v26  ;;  %s1730_s25 = smov 16   ;;  %vm1273_vm11 = vcmask 130048   ;;  %vm1275_vm12 = vcmask 195584  }
  0x11   : > { %vm1376_vm13 = vcmask 257024  }
  0x12   : > { %447 = vrot.lane.b32.xlu0 %v1669_v2, %s1715_s15  ;;  %1533 = vmatpush3.bf16.msra.mxu0 %v1669_v2  ;;  %v562_v34 = vand.u32 7, %v557_v33 }
  0x13   : > { %1546 = vmatprep.subr.bf16.mxu0 %v1714_v1 }
  0x14   : > { %v579_v35 = vand.u32 1, %v562_v34  ;;  %v593_v46 = vshra.s32 %v562_v34, 1  ;;  %v608_v56 = vshra.s32 %v562_v34, 2 }
  0x15   : > { %1535 = vmatmul.mubr.msk.bf16.vlgmr.msra.gmra.mxu0 %vm403_vm2, %v1832_v6 }
  0x16   : > { %1547 = vmatpush3.bf16.xpose.msra.mxu0 %v1830_v5  ;;  %1548 = vmatprep.mubr.msk.bf16.mxu0 %vm1716_vm0, %v1714_v1  ;;  %vm1874_vm5 = vcmp.ne.s32.totalorder %v579_v35, 0  ;;  %v1889_v47 = vand.u32 1, %v593_v46  ;;  %v1905_v57 = vand.u32 1, %v608_v56 }
  0x17   : > { %1558 = vmatprep.subr.bf16.mxu0 %v1714_v1 }
  0x18   : > { %vm595_vm7 = vcmp.ne.s32.totalorder %v1889_v47, 0  ;;  %vm610_vm9 = vcmp.ne.s32.totalorder %v1905_v57, 0 }
  0x80   : > { %v450_v7 = vpop.permute.xlu0 %449 }
  0x81   : > { %1539 = vmatpush3.bf16.msra.mxu1 %v450_v7 }
  0x82   : > { %1540 = vmatprep.subr.bf16.mxu1 %v1714_v1  ;;  %v454_v17 = vpop.permute.xlu1 %453 }
  0x84   : > { %v448_v8 = vpop.permute.xlu0 %447 }
  0x85   : > { %1541 = vmatpush3.bf16.msra.mxu1 %v448_v8 }
  0x86   : > { %1552 = vmatprep.subr.bf16.mxu1 %v1714_v1 }
  0x88   : > { %1543 = vmatmul.mubr.msk.bf16.vlgmr.msra.gmra.mxu1 %vm403_vm2, %v378_v9 }
  0x89   : > { %1554 = vmatprep.mubr.msk.bf16.mxu1 %vm1716_vm0, %v1714_v1 }
  0xd5   : > { %v441_v10 = vpop.f32.mrf.mxu0 }
  0xd6   : > { %v442_v11 = vadd.f32 %v1472_v4, %v441_v10 }
  0xd7   : > { %v1536_v12 = vpop.f32.mrf.mxu0 }
  0xd8   : > { %v499_v13 = vmul.f32 0.35355338, %v442_v11 }
  0xd9   : > { %v444_v14 = vpop.f32.mrf.mxu0 }
  0xda   : > { %v1849_v15 = vpack.c.bf16 %v499_v13, %v499_v13 }
  0xdb   : > { %v1537_v16 = vpop.f32.mrf.mxu0 }
  0xdc   : > { %1549 = vmatmul.mubr.msk.bf16.vlgmr.msra.gmra.mxu0 %vm510_vm1, %v1849_v15 }
  0xdd   : > { %1560 = vmatprep.mubr.msk.bf16.mxu0 %vm1716_vm0, %v1714_v1 }
 0x148   : > { %v493_v18 = vpop.f32.mrf.mxu1 }
 0x149   : > { %v494_v19 = vadd.f32 %v493_v18, %v454_v17 }
 0x14a   : > { %v1544_v20 = vpop.f32.mrf.mxu1 }
 0x14b   : > { %v1855_v21 = vpack.c.bf16 %v494_v19, %v494_v19 }
 0x14c   : > { %v496_v22 = vpop.f32.mrf.mxu1 }
 0x14d   : > { %v617_v23 = vsel %vm510_vm1, %v1855_v21, 0 }
 0x14e   : > { %1553 = vmatpush3.bf16.xpose.msra.mxu1 %v617_v23  ;;  %v1545_v24 = vpop.f32.mrf.mxu1 }
 0x14f   : > { %1564 = vmatprep.subr.bf16.mxu1 %v1714_v1 }
 0x155   : > { %1555 = vmatmul.mubr.msk.bf16.vlgmr.msra.gmra.mxu1 %vm510_vm1, %v1849_v15 }
 0x156   : > { %1565 = vmatpush3.bf16.xpose.msra.mxu1 %v1830_v5  ;;  %1566 = vmatprep.mubr.msk.bf16.mxu1 %vm1716_vm0, %v1714_v1 }
 0x157   : > { %1576 = vmatprep.subr.bf16.mxu1 %v1714_v1 }
 0x19c   : > { %v551_v29 = vpop.f32.mrf.mxu0 }
 0x19d   : > { %574 = vrot.lane.b32.xlu0 %v551_v29, %s1717_s29  ;;  %571 = vrot.lane.b32.xlu1 %v551_v29, %s1718_s30 }
 0x19e   : > { %v1550_v30 = vpop.f32.mrf.mxu0 }
 0x1a0   : > { %v554_v31 = vpop.f32.mrf.mxu0 }
 0x1a1   : > { %723 = vrot.lane.b32.xlu1 %v1849_v15, %s1719_s13 }
 0x1a2   : > { %v1551_v32 = vpop.f32.mrf.mxu0 }
 0x20f   : > { %v575_v37 = vpop.permute.xlu0 %574  ;;  %v572_v38 = vpop.permute.xlu1 %571 }
 0x210   : > { %v578_v39 = vsel %vm577_vm4, %v572_v38, %v575_v37 }
 0x211   : > { %v583_v40 = vsel %vm1874_vm5, %v578_v39, %v551_v29 }
 0x212   : > { %588 = vrot.lane.b32.xlu1 %v583_v40, %s1720_s14  ;;  %585 = vrot.lane.b32.xlu0 %v583_v40, %s1721_s16 }
 0x213   : > { %v1883_v41 = vpop.permute.xlu1 %723 }
 0x214   : > { %1567 = vmatmul.mubr.msk.bf16.vlgmr.msra.gmra.mxu1 %vm510_vm1, %v1883_v41 }
 0x215   : > { %v653_v42 = vpop.f32.mrf.mxu1  ;;  %1578 = vmatprep.mubr.msk.bf16.mxu1 %vm1716_vm0, %v1714_v1 }
 0x217   : > { %v1556_v43 = vpop.f32.mrf.mxu1 }
 0x219   : > { %v656_v44 = vpop.f32.mrf.mxu1 }
 0x21b   : > { %v1557_v45 = vpop.f32.mrf.mxu1 }
 0x284   : > { %v586_v48 = vpop.permute.xlu0 %585  ;;  %v589_v49 = vpop.permute.xlu1 %588 }
 0x285   : > { %v592_v50 = vsel %vm591_vm6, %v586_v48, %v589_v49 }
 0x286   : > { %v598_v51 = vsel %vm595_vm7, %v592_v50, %v583_v40 }
 0x287   : > { %603 = vrot.lane.b32.xlu1 %v598_v51, %s1722_s17  ;;  %600 = vrot.lane.b32.xlu0 %v598_v51, %s1723_s18 }
 0x28b   : > { %671 = vrot.lane.b32.xlu1 %v1855_v21, %s1715_s15  ;;  %s1725_s15 = smov 88  }
 0x28f   : > { %796 = vrot.lane.b32.xlu1 %v1855_v21, %s1719_s13 }
 0x2d4   : > { %v762_v52 = vpop.f32.mrf.mxu1 }
 0x2d5   : > { %769 = vrot.lane.b32.xlu1 %v762_v52, %s1718_s30 }
 0x2d6   : > { %v1568_v53 = vpop.f32.mrf.mxu1 }
 0x2d8   : > { %v765_v54 = vpop.f32.mrf.mxu1 }
 0x2d9   : > { %772 = vrot.lane.b32.xlu1 %v762_v52, %s1717_s29 }
 0x2da   : > { %v1569_v55 = vpop.f32.mrf.mxu1 }
 0x2dd   : > { %902 = vrot.lane.b32.xlu1 %v1849_v15, %s1724_s19 }
 0x2f9   : > { %v604_v58 = vpop.permute.xlu1 %603  ;;  %v601_v59 = vpop.permute.xlu0 %600 }
 0x2fa   : > { %v607_v60 = vsel %vm606_vm8, %v601_v59, %v604_v58 }
 0x2fb   : > { %v613_v61 = vsel %vm610_vm9, %v607_v60, %v598_v51 }
 0x2fc   : > { %v615_v62 = vsel %vm1866_vm3, %v613_v61, 0.0 }
 0x2fd   : > { %v672_v63 = vpop.permute.xlu1 %671  ;;  %v654_v0 = vadd.f32 %v653_v42, %v615_v62 }
 0x2fe   : > { %v678_v2 = vsel %vm676_vm10, %v672_v63, 0 }
 0x2ff   : > { %1559 = vmatpush3.bf16.msra.mxu0 %v678_v2  ;;  %v659_v3 = vsel %vm1866_vm3, %v654_v0, -1e+30 }
 0x300   : > { %v660_v4 = vsel %vm510_vm1, %v659_v3, -inf  ;;  %1570 = vmatprep.subr.bf16.mxu0 %v1714_v1 }
 0x301   : > { %661 = vmax.xlane.f32.xlu0 %v660_v4  ;;  %v797_v7 = vpop.permute.xlu1 %796 }
 0x302   : > { %v799_v18 = vsel %vm510_vm1, %v797_v7, 0 }
 0x347   : > { %v770_v8 = vpop.permute.xlu1 %769 }
 0x34b   : > { %v773_v9 = vpop.permute.xlu1 %772 }
 0x34c   : > { %v775_v10 = vsel %vm577_vm4, %v770_v8, %v773_v9 }
 0x34d   : > { %v776_v11 = vsel %vm1874_vm5, %v775_v10, %v762_v52 }
 0x34e   : > { %778 = vrot.lane.b32.xlu1 %v776_v11, %s1721_s16 }
 0x34f   : > { %v1938_v19 = vpop.permute.xlu1 %902 }
 0x352   : > { %781 = vrot.lane.b32.xlu1 %v776_v11, %s1720_s14 }
 0x38a   : > { %v662_v12 = vpop.xlane.xlu0 %661 }
 0x38b   : > { %v663_v13 = vsub.f32 %v659_v3, %v662_v12 }
 0x38d   : > { %v664_v14 = vmul.f32 1.442695, %v663_v13 }
 0x38f   : > { %1672 = vpow2.f32 %v664_v14 }
 0x39c   : > { %v1923_v16 = vpop.eup %1672 }
 0x39d   : > { %v669_v17 = vpack.c.bf16 %v1923_v16, %v1923_v16  ;;  %v666_v28 = vsel %vm510_vm1, %v1923_v16, 0.0  ;;  %v1671_v16 = vld [vmem:[%s2091_s5] sm:$0xff]  }
 0x39f   : > { %1561 = vmatmul.mubr.msk.bf16.vlgmr.msra.gmra.mxu0 %vm510_vm1, %v669_v17 }
 0x3a0   : > { %1571 = vmatpush3.bf16.xpose.msra.mxu0 %v799_v18  ;;  %1572 = vmatprep.mubr.msk.bf16.mxu0 %vm1716_vm0, %v1714_v1 }
 0x3a1   : > { %1582 = vmatprep.subr.bf16.mxu0 %v1714_v1 }
 0x3a7   : > { %1573 = vmatmul.mubr.msk.bf16.vlgmr.msra.gmra.mxu0 %vm510_vm1, %v1883_v41 }
 0x3a8   : > { %1583 = vmatpush3.bf16.xpose.msra.mxu0 %v1830_v5  ;;  %1584 = vmatprep.mubr.msk.bf16.mxu0 %vm1716_vm0, %v1714_v1 }
 0x3a9   : > { %1594 = vmatprep.subr.bf16.mxu0 %v1714_v1 }
 0x3af   : > { %1585 = vmatmul.mubr.msk.bf16.vlgmr.msra.gmra.mxu0 %vm510_vm1, %v1938_v19 }
 0x3b0   : > { %1596 = vmatprep.mubr.msk.bf16.mxu0 %vm1716_vm0, %v1714_v1 }
 0x3c0   : > { %v779_v20 = vpop.permute.xlu1 %778 }
 0x3c4   : > { %v782_v22 = vpop.permute.xlu1 %781 }
 0x3c5   : > { %v784_v23 = vsel %vm591_vm6, %v779_v20, %v782_v22 }
 0x3c6   : > { %v785_v24 = vsel %vm595_vm7, %v784_v23, %v776_v11 }
 0x3c7   : > { %787 = vrot.lane.b32.xlu1 %v785_v24, %s1723_s18  ;;  %790 = vrot.lane.b32.xlu0 %v785_v24, %s1722_s17 }
 0x3cb   : > { %852 = vrot.lane.b32.xlu0 %v1855_v21, %s1725_s15 }
 0x3cf   : > { %975 = vrot.lane.b32.xlu0 %v1855_v21, %s1724_s19 }
 0x439   : > { %v791_v25 = vpop.permute.xlu0 %790  ;;  %v788_v29 = vpop.permute.xlu1 %787 }
 0x43a   : > { %v793_v31 = vsel %vm606_vm8, %v788_v29, %v791_v25 }
 0x43b   : > { %v794_v34 = vsel %vm610_vm9, %v793_v31, %v785_v24 }
 0x43c   : > { %v795_v37 = vsel %vm1866_vm3, %v794_v34, 0.0 }
 0x43d   : > { %v853_v26 = vpop.permute.xlu0 %852 }
 0x43e   : > { %v858_v27 = vsel %vm676_vm10, %v853_v26, 0 }
 0x43f   : > { %1577 = vmatpush3.bf16.msra.mxu1 %v858_v27 }
 0x440   : > { %1588 = vmatprep.subr.bf16.mxu1 %v1714_v1 }
 0x441   : > { %v976_v50 = vpop.permute.xlu0 %975 }
 0x442   : > { %v978_v63 = vsel %vm510_vm1, %v976_v50, 0 }
 0x45f   : > { %v1954_v30 = vpop.f32.mrf.mxu0 }
 0x461   : > { %v1562_v32 = vpop.f32.mrf.mxu0 }
 0x463   : > { %v717_v33 = vpop.f32.mrf.mxu0 }
 0x465   : > { %v1563_v35 = vpop.f32.mrf.mxu0 }
 0x467   : > { %v835_v38 = vpop.f32.mrf.mxu0 }
 0x468   : > { %v836_v39 = vadd.f32 %v835_v38, %v795_v37 }
 0x469   : > { %v1574_v40 = vpop.f32.mrf.mxu0 }
 0x46a   : > { %v841_v41 = vsel %vm1866_vm3, %v836_v39, -1e+30 }
 0x46b   : > { %v838_v42 = vpop.f32.mrf.mxu0  ;;  %v842_v43 = vsel %vm510_vm1, %v841_v41, -inf }
 0x46c   : > { %843 = vmax.xlane.f32.xlu1 %v842_v43 }
 0x46d   : > { %v1575_v44 = vpop.f32.mrf.mxu0 }
 0x46f   : > { %v941_v45 = vpop.f32.mrf.mxu0 }
 0x470   : > { %948 = vrot.lane.b32.xlu0 %v941_v45, %s1718_s30 }
 0x471   : > { %v1586_v46 = vpop.f32.mrf.mxu0 }
 0x473   : > { %v944_v48 = vpop.f32.mrf.mxu0 }
 0x474   : > { %951 = vrot.lane.b32.xlu0 %v941_v45, %s1717_s29 }
 0x475   : > { %v1587_v49 = vpop.f32.mrf.mxu0 }
 0x47d   : > { %1081 = vrot.lane.b32.xlu1 %v1849_v15, %s1726_s20 }
 0x481   : > { %1031 = vrot.lane.b32.xlu1 %v1855_v21, %s1727_s21  ;;  %s375_s21 = scalar_lea.vmem %s2095_s9, %s1822_s22 }
 0x485   : > { %1154 = vrot.lane.b32.xlu1 %v1855_v21, %s1726_s20 }
 0x4e2   : > { %v949_v51 = vpop.permute.xlu0 %948 }
 0x4e6   : > { %v952_v52 = vpop.permute.xlu0 %951 }
 0x4e7   : > { %v954_v53 = vsel %vm577_vm4, %v949_v51, %v952_v52 }
 0x4e8   : > { %v955_v54 = vsel %vm1874_vm5, %v954_v53, %v941_v45 }
 0x4e9   : > { %957 = vrot.lane.b32.xlu0 %v955_v54, %s1721_s16 }
 0x4ed   : > { %960 = vrot.lane.b32.xlu0 %v955_v54, %s1720_s14 }
 0x4f5   : > { %v844_v55 = vpop.xlane.xlu1 %843 }
 0x4f6   : > { %v845_v56 = vsub.f32 %v841_v41, %v844_v55 }
 0x4f8   : > { %v846_v15 = vmul.f32 1.442695, %v845_v56 }
 0x4f9   : > { %v1974_v58 = vpop.permute.xlu1 %1081 }
 0x4fa   : > { %1674 = vpow2.f32 %v846_v15 }
 0x4fd   : > { %v1032_v59 = vpop.permute.xlu1 %1031 }
 0x4fe   : > { %v1037_v60 = vsel %vm676_vm10, %v1032_v59, 0 }
 0x4ff   : > { %1595 = vmatpush3.bf16.msra.mxu0 %v1037_v60 }
 0x500   : > { %1606 = vmatprep.subr.bf16.mxu0 %v1714_v1 }
 0x501   : > { %v1155_v31 = vpop.permute.xlu1 %1154 }
 0x502   : > { %v1157_v42 = vsel %vm510_vm1, %v1155_v31, 0 }
 0x507   : > { %v1978_v61 = vpop.eup %1674 }
 0x508   : > { %v851_v62 = vpack.c.bf16 %v1978_v61, %v1978_v61  ;;  %v848_v57 = vsel %vm510_vm1, %v1978_v61, 0.0 }
 0x50a   : > { %1579 = vmatmul.mubr.msk.bf16.vlgmr.msra.gmra.mxu1 %vm510_vm1, %v851_v62 }
 0x50b   : > { %1589 = vmatpush3.bf16.xpose.msra.mxu1 %v978_v63  ;;  %1590 = vmatprep.mubr.msk.bf16.mxu1 %vm1716_vm0, %v1714_v1 }
 0x50c   : > { %1600 = vmatprep.subr.bf16.mxu1 %v1714_v1 }
 0x512   : > { %1591 = vmatmul.mubr.msk.bf16.vlgmr.msra.gmra.mxu1 %vm510_vm1, %v1938_v19 }
 0x513   : > { %1601 = vmatpush3.bf16.xpose.msra.mxu1 %v1830_v5  ;;  %1602 = vmatprep.mubr.msk.bf16.mxu1 %vm1716_vm0, %v1714_v1 }
 0x514   : > { %1612 = vmatprep.subr.bf16.mxu1 %v1714_v1 }
 0x51a   : > { %1603 = vmatmul.mubr.msk.bf16.vlgmr.msra.gmra.mxu1 %vm510_vm1, %v1974_v58 }
 0x51b   : > { %1614 = vmatprep.mubr.msk.bf16.mxu1 %vm1716_vm0, %v1714_v1 }
 0x55b   : > { %v958_v0 = vpop.permute.xlu0 %957 }
 0x55f   : > { %v961_v2 = vpop.permute.xlu0 %960 }
 0x560   : > { %v963_v3 = vsel %vm591_vm6, %v958_v0, %v961_v2 }
 0x561   : > { %v964_v4 = vsel %vm595_vm7, %v963_v3, %v955_v54 }
 0x562   : > { %966 = vrot.lane.b32.xlu0 %v964_v4, %s1723_s18 }
 0x566   : > { %969 = vrot.lane.b32.xlu0 %v964_v4, %s1722_s17 }
 0x5ca   : > { %v2002_v5 = vpop.f32.mrf.mxu1 }
 0x5cc   : > { %v1580_v7 = vpop.f32.mrf.mxu1 }
 0x5ce   : > { %v897_v8 = vpop.f32.mrf.mxu1 }
 0x5d0   : > { %v1581_v9 = vpop.f32.mrf.mxu1 }
 0x5d2   : > { %v1014_v10 = vpop.f32.mrf.mxu1 }
 0x5d4   : > { %v1592_v11 = vpop.f32.mrf.mxu1  ;;  %v967_v12 = vpop.permute.xlu0 %966 }
 0x5d6   : > { %v1017_v13 = vpop.f32.mrf.mxu1 }
 0x5d8   : > { %v1593_v14 = vpop.f32.mrf.mxu1  ;;  %v970_v17 = vpop.permute.xlu0 %969 }
 0x5d9   : > { %v972_v18 = vsel %vm606_vm8, %v967_v12, %v970_v17  ;;  %v1670_v17 = vld [vmem:[%s2091_s5 + $0x8] sm:$0xff]  }
 0x5da   : > { %v973_v19 = vsel %vm610_vm9, %v972_v18, %v964_v4  ;;  %v1120_v20 = vpop.f32.mrf.mxu1 }
 0x5db   : > { %1127 = vrot.lane.b32.xlu1 %v1120_v20, %s1718_s30  ;;  %v974_v22 = vsel %vm1866_vm3, %v973_v19, 0.0  ;;  %s1731_s30 = smov 24  }
 0x5dc   : > { %v1604_v23 = vpop.f32.mrf.mxu1  ;;  %v1015_v24 = vadd.f32 %v1014_v10, %v974_v22 }
 0x5de   : > { %v1123_v25 = vpop.f32.mrf.mxu1  ;;  %v1020_v26 = vsel %vm1866_vm3, %v1015_v24, -1e+30 }
 0x5df   : > { %1130 = vrot.lane.b32.xlu1 %v1120_v20, %s1717_s29  ;;  %v1021_v27 = vsel %vm510_vm1, %v1020_v26, -inf }
 0x5e0   : > { %v1605_v29 = vpop.f32.mrf.mxu1  ;;  %1022 = vmax.xlane.f32.xlu0 %v1021_v27 }
 0x64d   : > { %v1128_v32 = vpop.permute.xlu1 %1127 }
 0x651   : > { %v1131_v33 = vpop.permute.xlu1 %1130 }
 0x652   : > { %v1133_v34 = vsel %vm577_vm4, %v1128_v32, %v1131_v33 }
 0x653   : > { %v1134_v35 = vsel %vm1874_vm5, %v1133_v34, %v1120_v20 }
 0x654   : > { %1136 = vrot.lane.b32.xlu1 %v1134_v35, %s1721_s16 }
 0x658   : > { %1139 = vrot.lane.b32.xlu1 %v1134_v35, %s1720_s14 }
 0x669   : > { %v1023_v37 = vpop.xlane.xlu0 %1022 }
 0x66a   : > { %v1024_v38 = vsub.f32 %v1020_v26, %v1023_v37  ;;  %v1489_v37 = vld [vmem:[%s2092_s6] ss:$0 sm:$0xff] }
 0x66c   : > { %v1025_v39 = vmul.f32 1.442695, %v1024_v38  ;;  %v379_v38 = vunpack.c.l.bf16 %v1832_v6 }
 0x66e   : > { %1676 = vpow2.f32 %v1025_v39 }
 0x67b   : > { %v1677_v40 = vpop.eup %1676 }
 0x67c   : > { %v1030_v41 = vpack.c.bf16 %v1677_v40, %v1677_v40  ;;  %v1027_v46 = vsel %vm510_vm1, %v1677_v40, 0.0 }
 0x67e   : > { %1597 = vmatmul.mubr.msk.bf16.vlgmr.msra.gmra.mxu0 %vm510_vm1, %v1030_v41 }
 0x67f   : > { %1607 = vmatpush3.bf16.xpose.msra.mxu0 %v1157_v42  ;;  %1608 = vmatprep.mubr.msk.bf16.mxu0 %vm1716_vm0, %v1714_v1 }
 0x680   : > { %1618 = vmatprep.subr.bf16.mxu0 %v1714_v1 }
 0x686   : > { %1609 = vmatmul.mubr.msk.bf16.vlgmr.msra.gmra.mxu0 %vm510_vm1, %v1974_v58 }
 0x687   : > { %1622 = vmatprep.mubr.msk.bf16.mxu0 %vm1716_vm0, %v1714_v1  ;;  %1619 = vmatpush3.bf16.msra.mxu0 %v1670_v17 }
 0x688   : > { %1620 = vmatprep.subr.bf16.mxu0 %v1714_v1 }
 0x68b   : > { %1621 = vmatpush3.bf16.msra.mxu0 %v1671_v16 }
 0x6c6   : > { %v1137_v36 = vpop.permute.xlu1 %1136 }
 0x6ca   : > { %v1140_v43 = vpop.permute.xlu1 %1139 }
 0x6cb   : > { %v1142_v44 = vsel %vm591_vm6, %v1137_v36, %v1140_v43 }
 0x6cc   : > { %v1143_v45 = vsel %vm595_vm7, %v1142_v44, %v1134_v35 }
 0x6cd   : > { %1145 = vrot.lane.b32.xlu1 %v1143_v45, %s1723_s18 }
 0x6d1   : > { %1148 = vrot.lane.b32.xlu1 %v1143_v45, %s1722_s17 }
 0x6d5   : > { %1210 = vrot.lane.b32.xlu1 %v1855_v21, %s1728_s23 }
 0x6f9   : > { %1028 = vadd.xlane.f32.xlu1 %v1027_v46 }
 0x73e   : > { %v1073_v48 = vpop.f32.mrf.mxu0 }
 0x73f   : > { %v1146_v49 = vpop.permute.xlu1 %1145 }
 0x740   : > { %v1598_v50 = vpop.f32.mrf.mxu0 }
 0x742   : > { %v1076_v51 = vpop.f32.mrf.mxu0 }
 0x743   : > { %v1149_v52 = vpop.permute.xlu1 %1148 }
 0x744   : > { %v1151_v53 = vsel %vm606_vm8, %v1146_v49, %v1149_v52  ;;  %v1599_v54 = vpop.f32.mrf.mxu0 }
 0x745   : > { %v1152_v47 = vsel %vm610_vm9, %v1151_v53, %v1143_v45  ;;  %v1493_v53 = vld [vmem:[%s2093_s7] ss:$0 sm:$0xff] }
 0x746   : > { %v1153_v55 = vsel %vm1866_vm3, %v1152_v47, 0.0  ;;  %v1193_v56 = vpop.f32.mrf.mxu0  ;;  %v1494_v47 = vld [vmem:[%s2094_s8] ss:$0 sm:$0xff] }
 0x747   : > { %v1194_v15 = vadd.f32 %v1193_v56, %v1153_v55  ;;  %v1211_v21 = vpop.permute.xlu1 %1210 }
 0x748   : > { %v1216_v58 = vsel %vm676_vm10, %v1211_v21, 0  ;;  %v1610_v59 = vpop.f32.mrf.mxu0 }
 0x749   : > { %1613 = vmatpush3.bf16.msra.mxu1 %v1216_v58  ;;  %v1199_v60 = vsel %vm1866_vm3, %v1194_v15, -1e+30 }
 0x74a   : > { %v1196_v62 = vpop.f32.mrf.mxu0  ;;  %v1200_v63 = vsel %vm510_vm1, %v1199_v60, -inf }
 0x74b   : > { %1201 = vmax.xlane.f32.xlu0 %v1200_v63 }
 0x74c   : > { %v1611_v0 = vpop.f32.mrf.mxu0 }
 0x74f   : > { %849 = vadd.xlane.f32.xlu0 %v848_v57 }
 0x782   : > { %v1029_v11 = vpop.xlane.xlu1 %1028 }
 0x7d4   : > { %v1202_v2 = vpop.xlane.xlu0 %1201 }
 0x7d5   : > { %v1203_v3 = vsub.f32 %v1199_v60, %v1202_v2 }
 0x7d7   : > { %v1204_v4 = vmul.f32 1.442695, %v1203_v3 }
 0x7d8   : > { %v850_v10 = vpop.xlane.xlu0 %849 }
 0x7d9   : > { %1678 = vpow2.f32 %v1204_v4 }
 0x7da   : > { %1680 = vrcp.f32 %v850_v10 }
 0x7db   : > { %1682 = vrcp.f32 %v1029_v11 }
 0x7e6   : > { %v1679_v7 = vpop.eup %1678 }
 0x7e7   : > { %v1206_v8 = vsel %vm510_vm1, %v1679_v7, 0.0  ;;  %v1209_v9 = vpack.c.bf16 %v1679_v7, %v1679_v7  ;;  %v1681_v61 = vpop.eup %1680 }
 0x7e8   : > { %1207 = vadd.xlane.f32.xlu0 %v1206_v8  ;;  %v901_v12 = vmul.f32 %v1681_v61, %v2002_v5  ;;  %v1683_v13 = vpop.eup %1682 }
 0x7e9   : > { %1615 = vmatmul.mubr.msk.bf16.vlgmr.msra.gmra.mxu1 %vm510_vm1, %v1209_v9  ;;  %v1080_v14 = vmul.f32 %v1683_v13, %v1073_v48 }
 0x7ec   : > { %667 = vadd.xlane.f32.xlu0 %v666_v28 }
 0x802   : > { %1261 = vrot.lane.b32.xlu0 %v901_v12, %s1729_s24 }
 0x806   : > { %1265 = vrot.lane.b32.xlu0 %v1080_v14, %s1730_s25 }
 0x871   : > { %v1208_v18 = vpop.xlane.xlu0 %1207 }
 0x872   : > { %1684 = vrcp.f32 %v1208_v18 }
 0x875   : > { %v668_v25 = vpop.xlane.xlu0 %667 }
 0x876   : > { %1686 = vrcp.f32 %v668_v25 }
 0x879   : > { %v1262_v29 = vpop.permute.xlu0 %1261 }
 0x87d   : > { %v1266_v1 = vpop.permute.xlu0 %1265 }
 0x87f   : > { %v1685_v5 = vpop.eup %1684 }
 0x883   : > { %v1687_v26 = vpop.eup %1686 }
 0x884   : > { %v721_v27 = vmul.f32 %v1687_v26, %v1954_v30 }
 0x886   : > { %v1272_v31 = vsel %vm510_vm1, %v721_v27, %v1262_v29 }
 0x887   : > { %v1274_v32 = vsel %vm1273_vm11, %v1272_v31, %v1266_v1 }
 0x8a9   : > { %v1252_v19 = vpop.f32.mrf.mxu1 }
 0x8aa   : > { %v1259_v20 = vmul.f32 %v1685_v5, %v1252_v19 }
 0x8ab   : > { %v1616_v22 = vpop.f32.mrf.mxu1 }
 0x8ac   : > { %1269 = vrot.lane.b32.xlu1 %v1259_v20, %s1731_s30 }
 0x8ad   : > { %v1255_v23 = vpop.f32.mrf.mxu1 }
 0x8af   : > { %v1617_v24 = vpop.f32.mrf.mxu1 }
 0x91e   : > { %v1270_v33 = vpop.permute.xlu1 %1269 }
 0x91f   : > { %v1276_v34 = vsel %vm1275_vm12, %v1274_v32, %v1270_v33 }
 0x920   : > { %v1277_v35 = vpack.c.bf16 %v1276_v34, %v1276_v34 }
 0x922   : > { %1623 = vmatmul.mubr.msk.bf16.vlgmr.msra.gmra.mxu0 %vm403_vm2, %v1277_v35 }
 0x9e2   : > { %v1338_v39 = vpop.f32.mrf.mxu0 }
 0x9e3   : > { %v1339_v30 = vadd.f32 %v1489_v37, %v1338_v39 }
 0x9e4   : > { %v1624_v40 = vpop.f32.mrf.mxu0 }
 0x9e5   : > { %v1344_v41 = vadd.f32 %v1339_v30, %v379_v38 }
 0x9e6   : > { %v1341_v42 = vpop.f32.mrf.mxu0 }
 0x9e7   : > { %v1345_v36 = vsel %vm403_vm2, %v1344_v41, 0.0 }
 0x9e8   : > { %v1625_v43 = vpop.f32.mrf.mxu0  ;;  %1346 = vadd.xlane.f32.xlu0 %v1345_v36 }
 0xa71   : > { %v1347_v44 = vpop.xlane.xlu0 %1346 }
 0xa72   : > { %v1349_v45 = vmul.f32 0.03125, %v1347_v44 }
 0xa74   : > { %v1350_v46 = vsub.f32 %v1344_v41, %v1349_v45 }
 0xa76   : > { %v1351_v48 = vmul.f32 %v1350_v46, %v1350_v46 }
 0xa78   : > { %v1352_v49 = vsel %vm403_vm2, %v1351_v48, 0.0 }
 0xa79   : > { %1353 = vadd.xlane.f32.xlu1 %v1352_v49 }
 0xb02   : > { %v1354_v50 = vpop.xlane.xlu1 %1353 }
 0xb03   : > { %v1355_v51 = vmul.f32 0.03125, %v1354_v50 }
 0xb05   : > { %v1356_v6 = vadd.f32 1e-05, %v1355_v51 }
 0xb07   : > { %1688 = vrsqrt.f32 %v1356_v6 }
 0xb14   : > { %v1689_v52 = vpop.eup %1688 }
 0xb15   : > { %v1358_v54 = vmul.f32 %v1689_v52, %v1350_v46 }
 0xb17   : > { %v1366_v55 = vmul.f32 %v1493_v53, %v1358_v54 }
 0xb19   : > { %v1374_v56 = vadd.f32 %v1494_v47, %v1366_v55 }
 0xb1b   : > { %v1375_v15 = vpack.c.bf16 %v1374_v56, %v1374_v56 }
 0xb1d   : > { %1377 = vst.msk [vmem:[%s375_s21] sm:$0xf] %vm1376_vm13, %v1375_v15 }
 0xb1e PF: > { %s19_s11 = sadd.s32 1, %s1712_s11   ;;  %s2100_s30 = smov %s1708_s10 }
 0xb1f   : > { %p16_p5 = scmp.ge.s32.totalorder %s19_s11, 4   ;;  %s2101_s10 = smov %s2103_s12 }
 0xb21   :  { %18 = sbr.rel (!%p16_p5) target bundleno = 2 (0x2), region = 89 }

</bundles_post_ra>
